<compile_context>
chip_gen: v6e
topology: v6e:2x2x1
jax: 0.10.0
libtpu: 0.0.40
codegen_flags: <defaults>
</compile_context>

<pallas_src>
import numpy as np
import jax
import jax.numpy as jnp
from jax.experimental import pallas as pl
from jax.experimental.pallas import tpu as pltpu


_BINOMIAL = {
    1: [1.0],
    2: [1.0, 1.0],
    3: [1.0, 2.0, 1.0],
    4: [1.0, 3.0, 3.0, 1.0],
    5: [1.0, 4.0, 6.0, 4.0, 1.0],
    6: [1.0, 5.0, 10.0, 10.0, 5.0, 1.0],
    7: [1.0, 6.0, 15.0, 20.0, 15.0, 6.0, 1.0],
}


def _filter_1d(filter_size):
    a = np.array(_BINOMIAL[filter_size], dtype=np.float64)
    return a / a.sum()          # fa ⊗ fa == (a ⊗ a) / sum(a ⊗ a), the module's buffer


def _make_filter_2d(filter_size):
    a = np.array(_BINOMIAL[filter_size], dtype=np.float64)
    f = a[:, None] * a[None, :]
    return f / f.sum()


def _make_kernel(fa, fs, stride, cb, th, wq, w_out, use_halo):
    """Kernel closure over the static binomial taps.

    Block layouts (per grid step):
      xm_ref : (s, s, cb, th, wq)  phase planes, main rows of this tile
      xh_ref : (s, s, cb, 8,  wq)  phase planes, first 8 rows of the next tile (halo)
      o_ref  : (cb, th, w_out)
    Everything accumulates in f32 vregs; one store per channel.
    """
    s = stride
    vtaps = [(float(fa[dy]), dy // s, dy % s) for dy in range(fs)]   # (coef, qy, py)
    htaps = [(float(fa[dx]), dx // s, dx % s) for dx in range(fs)]   # (coef, qx, px)

    def body(xm_ref, xh_ref, o_ref):
        for ci in range(cb):
            # ---- vertical (row) pass: one (th, wq) f32 slab per horizontal phase ----
            v_planes = []
            for px in range(s):
                acc_v = None
                for coef, qy, py in vtaps:
                    if qy == 0:
                        rows = xm_ref[py, px, ci, :, :]
                    else:
                        top = xm_ref[py, px, ci, pl.ds(qy, th - qy), :]
                        bot = xh_ref[py, px, ci, pl.ds(0, qy), :]
                        rows = jnp.concatenate([top, bot], axis=0)
                    term = coef * rows.astype(jnp.float32)
                    acc_v = term if acc_v is None else acc_v + term
                v_planes.append(acc_v)

            # ---- horizontal (lane) pass: fs taps, static lane slices ----
            acc = None
            for coef, qx, px in htaps:
                t = v_planes[px][:, qx:qx + w_out]
                term = coef * t
                acc = term if acc is None else acc + term

            o_ref[ci, :, :] = acc.astype(o_ref.dtype)

    if use_halo:
        def kernel(xm_ref, xh_ref, o_ref):
            body(xm_ref, xh_ref, o_ref)
    else:
        def kernel(xm_ref, o_ref):
            body(xm_ref, None, o_ref)
    return kernel


def downsample(x, pad_type="reflect", filter_size=3, stride=2, pad_off=0,
               tile_rows=256):
    """Equivalent of DownSample.forward for NCHW input `x`."""
    n, c, h, w = x.shape
    fs, s = filter_size, stride
    p0 = int(1.0 * (fs - 1) / 2)
    p1 = int(np.ceil(1.0 * (fs - 1) / 2))
    pads = [p + pad_off for p in (p0, p1, p0, p1)]        # [left, right, top, bottom]
    mode = {"reflect": "reflect", "replication": "edge"}[pad_type]
    if mode == "reflect":
        assert pads[0] < w and pads[1] < w and pads[2] < h and pads[3] < h, \
            "reflect pad width must be smaller than the spatial dim"

    if fs == 1:
        # Pure strided slicing — no conv compute, stays in plain JAX.
        if pad_off == 0:
            return x[:, :, ::s, ::s]
        xp = jnp.pad(x, ((0, 0), (0, 0), (pads[2], pads[3]), (pads[0], pads[1])),
                     mode=mode)
        return xp[:, :, ::s, ::s]

    # Reflection / replication padding (matches nn.ReflectionPad2d / ReplicationPad2d).
    xp = jnp.pad(x, ((0, 0), (0, 0), (pads[2], pads[3]), (pads[0], pads[1])), mode=mode)
    hp = h + pads[2] + pads[3]
    wp = w + pads[0] + pads[1]
    h_out = (hp - fs) // s + 1
    w_out = (wp - fs) // s + 1

    b = n * c
    wq = -(-wp // s)                  # ceil(wp / s)  -> lane axis width per phase
    hq_real = -(-hp // s)
    q_max = (fs - 1) // s             # halo size in phase-rows
    use_halo = q_max > 0

    # Output-row tile: multiple of 8, bounded by a live-vreg budget (we accumulate in
    # vregs now, not VMEM) and by what is actually needed to cover h_out.
    live_budget = 96 * 1024                                # bytes of f32 live per channel
    th_cap = max(8, (live_budget // (4 * (s * wq + w_out))) // 8 * 8)
    th_need = -(-h_out // 8) * 8
    th = max(8, min(th_cap, th_need, (max(tile_rows, 8) // 8) * 8))
    n_tiles = -(-h_out // th)
    h_out_pad = n_tiles * th
    hq_pad = max(hq_real, h_out_pad + (8 if use_halo else 0))

    # Channels per grid step: largest divisor of N*C with a main DMA block <= ~2 MiB
    # (and a short unrolled in-kernel channel loop).
    per_chan_bytes = x.dtype.itemsize * s * s * th * wq
    cb_cap = int(max(1, min(8, b, (2 * 1024 * 1024) // max(1, per_chan_bytes))))
    cb = 1
    for d in range(1, cb_cap + 1):
        if b % d == 0:
            cb = d
    nb = b // cb

    # One alignment pad + one phase-deinterleave transpose:
    #   (N*C, Hq*s, Wq*s) -> (s, s, N*C, Hq, Wq)  with Wq on the lane axis.
    # TODO(synk): remove this extra HBM pass by decimating in-kernel with strided pl.ds.
    xp = xp.reshape(b, hp, wp)
    xp = jnp.pad(xp, ((0, 0), (0, hq_pad * s - hp), (0, wq * s - wp)))
    ph = xp.reshape(b, hq_pad, s, wq, s).transpose(2, 4, 0, 1, 3)

    fa = _filter_1d(fs)
    kernel = _make_kernel(fa, fs, s, cb, th, wq, w_out, use_halo)
    halo_step = th // 8    # exact: th is a multiple of 8

    # Put the larger axis first so megacore (v7x, 2 TCs) shards the balanced one.
    swap = n_tiles > nb
    if swap:
        grid = (n_tiles, nb)
        main_map = lambda ti, bi: (0, 0, bi, ti, 0)
        halo_map = lambda ti, bi: (0, 0, bi, (ti + 1) * halo_step, 0)
        out_map = lambda ti, bi: (bi, ti, 0)
    else:
        grid = (nb, n_tiles)
        main_map = lambda bi, ti: (0, 0, bi, ti, 0)
        halo_map = lambda bi, ti: (0, 0, bi, (ti + 1) * halo_step, 0)
        out_map = lambda bi, ti: (bi, ti, 0)

    in_specs = [pl.BlockSpec((s, s, cb, th, wq), main_map)]
    operands = [ph]
    if use_halo:
        in_specs.append(pl.BlockSpec((s, s, cb, 8, wq), halo_map))
        operands.append(ph)

    block_bytes = (x.dtype.itemsize * s * s * cb * wq * (th + (8 if use_halo else 0))
                   + x.dtype.itemsize * cb * th * w_out)
    vmem_limit = int(min(64 * 2 ** 20, max(32 * 2 ** 20, 3 * block_bytes)))

    out = pl.pallas_call(
        kernel,
        out_shape=jax.ShapeDtypeStruct((b, h_out_pad, w_out), x.dtype),
        grid=grid,
        in_specs=in_specs,
        out_specs=pl.BlockSpec((cb, th, w_out), out_map),
        compiler_params=pltpu.CompilerParams(
            dimension_semantics=("parallel", "parallel"),
            vmem_limit_bytes=vmem_limit),
    )(*operands)

    return out[:, :h_out, :].reshape(n, c, h_out, w_out)


def _reference_np(x_np, pad_type="reflect", filter_size=3, stride=2, pad_off=0):
    """Exact float64 numpy reference: pad + strided depthwise binomial conv."""
    fs = filter_size
    p0 = int(1.0 * (fs - 1) / 2)
    p1 = int(np.ceil(1.0 * (fs - 1) / 2))
    pads = [p + pad_off for p in (p0, p1, p0, p1)]
    mode = {"reflect": "reflect", "replication": "edge"}[pad_type]
    if fs == 1:
        if pad_off == 0:
            return x_np[:, :, ::stride, ::stride].astype(np.float64)
        xp = np.pad(x_np.astype(np.float64),
                    ((0, 0), (0, 0), (pads[2], pads[3]), (pads[0], pads[1])), mode=mode)
        return xp[:, :, ::stride, ::stride]
    xp = np.pad(x_np.astype(np.float64),
                ((0, 0), (0, 0), (pads[2], pads[3]), (pads[0], pads[1])), mode=mode)
    hp, wp = xp.shape[2], xp.shape[3]
    h_out = (hp - fs) // stride + 1
    w_out = (wp - fs) // stride + 1
    filt = _make_filter_2d(fs)
    out = np.zeros(xp.shape[:2] + (h_out, w_out), np.float64)
    for dy in range(fs):
        for dx in range(fs):
            out += filt[dy, dx] * xp[:, :,
                                     dy:dy + h_out * stride:stride,
                                     dx:dx + w_out * stride:stride]
    return out


if __name__ == "__main__":
    key = jax.random.PRNGKey(0)
    x = jax.random.normal(key, (2, 4, 16, 16), dtype=jnp.float32)  # NCHW

    # Main case: the module's defaults (reflect pad, filter_size=3, stride=2).
    fn = jax.jit(lambda t: downsample(t, pad_type="reflect", filter_size=3,
                                      stride=2, pad_off=0))
    out = jax.block_until_ready(fn(x))
    assert out.shape == (2, 4, 8, 8), out.shape
    ref = _reference_np(np.asarray(x), "reflect", 3, 2, 0)
    np.testing.assert_allclose(np.asarray(out), ref.astype(np.float32),
                               rtol=1e-5, atol=1e-5)

    # Extra configs: larger filter (replication pad) and the no-halo (stride>=fs) path.
    out5 = jax.block_until_ready(
        jax.jit(lambda t: downsample(t, "replication", 5, 2, 0))(x))
    np.testing.assert_allclose(np.asarray(out5),
                               _reference_np(np.asarray(x), "replication", 5, 2, 0)
                               .astype(np.float32), rtol=1e-5, atol=1e-5)

    out2 = jax.block_until_ready(
        jax.jit(lambda t: downsample(t, "reflect", 2, 2, 0))(x))
    np.testing.assert_allclose(np.asarray(out2),
                               _reference_np(np.asarray(x), "reflect", 2, 2, 0)
                               .astype(np.float32), rtol=1e-5, atol=1e-5)

    print("KERNEL_OK")
</pallas_src>

<mosaic_0001>
module attributes {stable_mosaic.version = 11 : i64} {
  func.func @kernel(%arg0: i32, %arg1: i32, %arg2: memref<2x2x8x8x9xf32, #tpu.memory_space<vmem>>, %arg3: memref<2x2x8x8x9xf32, #tpu.memory_space<vmem>>, %arg4: memref<8x8x8xf32, #tpu.memory_space<vmem>>) attributes {dimension_semantics = [#tpu.dimension_semantics<parallel>, #tpu.dimension_semantics<parallel>], iteration_bounds = array<i64: 1, 1>, scalar_prefetch = 0 : i64, scratch_operands = 0 : i64, tpu.core_type = #tpu.core_type<tc>, window_params = [{transform_indices = @transform_0, window_bounds = array<i64: 2, 2, 8, 8, 9>}, {transform_indices = @transform_1, window_bounds = array<i64: 2, 2, 8, 8, 9>}, {transform_indices = @transform_2, window_bounds = array<i64: 8, 8, 8>}]} {
    %c0 = arith.constant 0 : index
    %c0_0 = arith.constant 0 : index
    %c0_1 = arith.constant 0 : index
    %c0_2 = arith.constant 0 : index
    %c0_3 = arith.constant 0 : index
    %0 = vector.load %arg2[%c0, %c0_0, %c0_1, %c0_2, %c0_3] : memref<2x2x8x8x9xf32, #tpu.memory_space<vmem>>, vector<1x1x1x8x9xf32>
    %1 = vector.shape_cast %0 : vector<1x1x1x8x9xf32> to vector<8x9xf32>
    %cst = arith.constant 2.500000e-01 : f32
    %2 = vector.broadcast %cst : f32 to vector<8x9xf32>
    %3 = arith.mulf %2, %1 : vector<8x9xf32>
    %c1 = arith.constant 1 : index
    %c0_4 = arith.constant 0 : index
    %c0_5 = arith.constant 0 : index
    %c0_6 = arith.constant 0 : index
    %c0_7 = arith.constant 0 : index
    %4 = vector.load %arg2[%c1, %c0_4, %c0_5, %c0_6, %c0_7] : memref<2x2x8x8x9xf32, #tpu.memory_space<vmem>>, vector<1x1x1x8x9xf32>
    %5 = vector.shape_cast %4 : vector<1x1x1x8x9xf32> to vector<8x9xf32>
    %cst_8 = arith.constant 5.000000e-01 : f32
    %6 = vector.broadcast %cst_8 : f32 to vector<8x9xf32>
    %7 = arith.mulf %6, %5 : vector<8x9xf32>
    %8 = arith.addf %3, %7 : vector<8x9xf32>
    %c0_9 = arith.constant 0 : index
    %c0_10 = arith.constant 0 : index
    %c0_11 = arith.constant 0 : index
    %c1_12 = arith.constant 1 : index
    %c0_13 = arith.constant 0 : index
    %9 = vector.load %arg2[%c0_9, %c0_10, %c0_11, %c1_12, %c0_13] : memref<2x2x8x8x9xf32, #tpu.memory_space<vmem>>, vector<1x1x1x7x9xf32>
    %10 = vector.shape_cast %9 : vector<1x1x1x7x9xf32> to vector<7x9xf32>
    %c0_14 = arith.constant 0 : index
    %c0_15 = arith.constant 0 : index
    %c0_16 = arith.constant 0 : index
    %c0_17 = arith.constant 0 : index
    %c0_18 = arith.constant 0 : index
    %11 = vector.load %arg3[%c0_14, %c0_15, %c0_16, %c0_17, %c0_18] : memref<2x2x8x8x9xf32, #tpu.memory_space<vmem>>, vector<1x1x1x1x9xf32>
    %12 = vector.shape_cast %11 : vector<1x1x1x1x9xf32> to vector<1x9xf32>
    %13 = tpu.concatenate %10, %12 in 0 : vector<7x9xf32>, vector<1x9xf32> -> vector<8x9xf32>
    %cst_19 = arith.constant 2.500000e-01 : f32
    %14 = vector.broadcast %cst_19 : f32 to vector<8x9xf32>
    %15 = arith.mulf %14, %13 : vector<8x9xf32>
    %16 = arith.addf %8, %15 : vector<8x9xf32>
    %c0_20 = arith.constant 0 : index
    %c1_21 = arith.constant 1 : index
    %c0_22 = arith.constant 0 : index
    %c0_23 = arith.constant 0 : index
    %c0_24 = arith.constant 0 : index
    %17 = vector.load %arg2[%c0_20, %c1_21, %c0_22, %c0_23, %c0_24] : memref<2x2x8x8x9xf32, #tpu.memory_space<vmem>>, vector<1x1x1x8x9xf32>
    %18 = vector.shape_cast %17 : vector<1x1x1x8x9xf32> to vector<8x9xf32>
    %cst_25 = arith.constant 2.500000e-01 : f32
    %19 = vector.broadcast %cst_25 : f32 to vector<8x9xf32>
    %20 = arith.mulf %19, %18 : vector<8x9xf32>
    %c1_26 = arith.constant 1 : index
    %c1_27 = arith.constant 1 : index
    %c0_28 = arith.constant 0 : index
    %c0_29 = arith.constant 0 : index
    %c0_30 = arith.constant 0 : index
    %21 = vector.load %arg2[%c1_26, %c1_27, %c0_28, %c0_29, %c0_30] : memref<2x2x8x8x9xf32, #tpu.memory_space<vmem>>, vector<1x1x1x8x9xf32>
    %22 = vector.shape_cast %21 : vector<1x1x1x8x9xf32> to vector<8x9xf32>
    %cst_31 = arith.constant 5.000000e-01 : f32
    %23 = vector.broadcast %cst_31 : f32 to vector<8x9xf32>
    %24 = arith.mulf %23, %22 : vector<8x9xf32>
    %25 = arith.addf %20, %24 : vector<8x9xf32>
    %c0_32 = arith.constant 0 : index
    %c1_33 = arith.constant 1 : index
    %c0_34 = arith.constant 0 : index
    %c1_35 = arith.constant 1 : index
    %c0_36 = arith.constant 0 : index
    %26 = vector.load %arg2[%c0_32, %c1_33, %c0_34, %c1_35, %c0_36] : memref<2x2x8x8x9xf32, #tpu.memory_space<vmem>>, vector<1x1x1x7x9xf32>
    %27 = vector.shape_cast %26 : vector<1x1x1x7x9xf32> to vector<7x9xf32>
    %c0_37 = arith.constant 0 : index
    %c1_38 = arith.constant 1 : index
    %c0_39 = arith.constant 0 : index
    %c0_40 = arith.constant 0 : index
    %c0_41 = arith.constant 0 : index
    %28 = vector.load %arg3[%c0_37, %c1_38, %c0_39, %c0_40, %c0_41] : memref<2x2x8x8x9xf32, #tpu.memory_space<vmem>>, vector<1x1x1x1x9xf32>
    %29 = vector.shape_cast %28 : vector<1x1x1x1x9xf32> to vector<1x9xf32>
    %30 = tpu.concatenate %27, %29 in 0 : vector<7x9xf32>, vector<1x9xf32> -> vector<8x9xf32>
    %cst_42 = arith.constant 2.500000e-01 : f32
    %31 = vector.broadcast %cst_42 : f32 to vector<8x9xf32>
    %32 = arith.mulf %31, %30 : vector<8x9xf32>
    %33 = arith.addf %25, %32 : vector<8x9xf32>
    %34 = vector.extract_strided_slice %16 {offsets = [0, 0], sizes = [8, 8], strides = [1, 1]} : vector<8x9xf32> to vector<8x8xf32>
    %cst_43 = arith.constant 2.500000e-01 : f32
    %35 = vector.broadcast %cst_43 : f32 to vector<8x8xf32>
    %36 = arith.mulf %35, %34 : vector<8x8xf32>
    %37 = vector.extract_strided_slice %33 {offsets = [0, 0], sizes = [8, 8], strides = [1, 1]} : vector<8x9xf32> to vector<8x8xf32>
    %cst_44 = arith.constant 5.000000e-01 : f32
    %38 = vector.broadcast %cst_44 : f32 to vector<8x8xf32>
    %39 = arith.mulf %38, %37 : vector<8x8xf32>
    %40 = arith.addf %36, %39 : vector<8x8xf32>
    %41 = vector.extract_strided_slice %16 {offsets = [0, 1], sizes = [8, 8], strides = [1, 1]} : vector<8x9xf32> to vector<8x8xf32>
    %cst_45 = arith.constant 2.500000e-01 : f32
    %42 = vector.broadcast %cst_45 : f32 to vector<8x8xf32>
    %43 = arith.mulf %42, %41 : vector<8x8xf32>
    %44 = arith.addf %40, %43 : vector<8x8xf32>
    %c0_46 = arith.constant 0 : index
    %c0_47 = arith.constant 0 : index
    %c0_48 = arith.constant 0 : index
    %45 = vector.load %arg4[%c0_46, %c0_47, %c0_48] : memref<8x8x8xf32, #tpu.memory_space<vmem>>, vector<1x8x8xf32>
    %46 = vector.shape_cast %45 : vector<1x8x8xf32> to vector<8x8xf32>
    %47 = vector.shape_cast %44 : vector<8x8xf32> to vector<1x8x8xf32>
    tpu.vector_store %arg4[%c0_46, %c0_47, %c0_48], %47 {strides = array<i32>} : memref<8x8x8xf32, #tpu.memory_space<vmem>>, vector<1x8x8xf32>,
    %c0_49 = arith.constant 0 : index
    %c0_50 = arith.constant 0 : index
    %c1_51 = arith.constant 1 : index
    %c0_52 = arith.constant 0 : index
    %c0_53 = arith.constant 0 : index
    %48 = vector.load %arg2[%c0_49, %c0_50, %c1_51, %c0_52, %c0_53] : memref<2x2x8x8x9xf32, #tpu.memory_space<vmem>>, vector<1x1x1x8x9xf32>
    %49 = vector.shape_cast %48 : vector<1x1x1x8x9xf32> to vector<8x9xf32>
    %cst_54 = arith.constant 2.500000e-01 : f32
    %50 = vector.broadcast %cst_54 : f32 to vector<8x9xf32>
    %51 = arith.mulf %50, %49 : vector<8x9xf32>
    %c1_55 = arith.constant 1 : index
    %c0_56 = arith.constant 0 : index
    %c1_57 = arith.constant 1 : index
    %c0_58 = arith.constant 0 : index
    %c0_59 = arith.constant 0 : index
    %52 = vector.load %arg2[%c1_55, %c0_56, %c1_57, %c0_58, %c0_59] : memref<2x2x8x8x9xf32, #tpu.memory_space<vmem>>, vector<1x1x1x8x9xf32>
    %53 = vector.shape_cast %52 : vector<1x1x1x8x9xf32> to vector<8x9xf32>
    %cst_60 = arith.constant 5.000000e-01 : f32
    %54 = vector.broadcast %cst_60 : f32 to vector<8x9xf32>
    %55 = arith.mulf %54, %53 : vector<8x9xf32>
    %56 = arith.addf %51, %55 : vector<8x9xf32>
    %c0_61 = arith.constant 0 : index
    %c0_62 = arith.constant 0 : index
    %c1_63 = arith.constant 1 : index
    %c1_64 = arith.constant 1 : index
    %c0_65 = arith.constant 0 : index
    %57 = vector.load %arg2[%c0_61, %c0_62, %c1_63, %c1_64, %c0_65] : memref<2x2x8x8x9xf32, #tpu.memory_space<vmem>>, vector<1x1x1x7x9xf32>
    %58 = vector.shape_cast %57 : vector<1x1x1x7x9xf32> to vector<7x9xf32>
    %c0_66 = arith.constant 0 : index
    %c0_67 = arith.constant 0 : index
    %c1_68 = arith.constant 1 : index
    %c0_69 = arith.constant 0 : index
    %c0_70 = arith.constant 0 : index
    %59 = vector.load %arg3[%c0_66, %c0_67, %c1_68, %c0_69, %c0_70] : memref<2x2x8x8x9xf32, #tpu.memory_space<vmem>>, vector<1x1x1x1x9xf32>
    %60 = vector.shape_cast %59 : vector<1x1x1x1x9xf32> to vector<1x9xf32>
    %61 = tpu.concatenate %58, %60 in 0 : vector<7x9xf32>, vector<1x9xf32> -> vector<8x9xf32>
    %cst_71 = arith.constant 2.500000e-01 : f32
    %62 = vector.broadcast %cst_71 : f32 to vector<8x9xf32>
    %63 = arith.mulf %62, %61 : vector<8x9xf32>
    %64 = arith.addf %56, %63 : vector<8x9xf32>
    %c0_72 = arith.constant 0 : index
    %c1_73 = arith.constant 1 : index
    %c1_74 = arith.constant 1 : index
    %c0_75 = arith.constant 0 : index
    %c0_76 = arith.constant 0 : index
    %65 = vector.load %arg2[%c0_72, %c1_73, %c1_74, %c0_75, %c0_76] : memref<2x2x8x8x9xf32, #tpu.memory_space<vmem>>, vector<1x1x1x8x9xf32>
    %66 = vector.shape_cast %65 : vector<1x1x1x8x9xf32> to vector<8x9xf32>
    %cst_77 = arith.constant 2.500000e-01 : f32
    %67 = vector.broadcast %cst_77 : f32 to vector<8x9xf32>
    %68 = arith.mulf %67, %66 : vector<8x9xf32>
    %c1_78 = arith.constant 1 : index
    %c1_79 = arith.constant 1 : index
    %c1_80 = arith.constant 1 : index
    %c0_81 = arith.constant 0 : index
    %c0_82 = arith.constant 0 : index
    %69 = vector.load %arg2[%c1_78, %c1_79, %c1_80, %c0_81, %c0_82] : memref<2x2x8x8x9xf32, #tpu.memory_space<vmem>>, vector<1x1x1x8x9xf32>
    %70 = vector.shape_cast %69 : vector<1x1x1x8x9xf32> to vector<8x9xf32>
    %cst_83 = arith.constant 5.000000e-01 : f32
    %71 = vector.broadcast %cst_83 : f32 to vector<8x9xf32>
    %72 = arith.mulf %71, %70 : vector<8x9xf32>
    %73 = arith.addf %68, %72 : vector<8x9xf32>
    %c0_84 = arith.constant 0 : index
    %c1_85 = arith.constant 1 : index
    %c1_86 = arith.constant 1 : index
    %c1_87 = arith.constant 1 : index
    %c0_88 = arith.constant 0 : index
    %74 = vector.load %arg2[%c0_84, %c1_85, %c1_86, %c1_87, %c0_88] : memref<2x2x8x8x9xf32, #tpu.memory_space<vmem>>, vector<1x1x1x7x9xf32>
    %75 = vector.shape_cast %74 : vector<1x1x1x7x9xf32> to vector<7x9xf32>
    %c0_89 = arith.constant 0 : index
    %c1_90 = arith.constant 1 : index
    %c1_91 = arith.constant 1 : index
    %c0_92 = arith.constant 0 : index
    %c0_93 = arith.constant 0 : index
    %76 = vector.load %arg3[%c0_89, %c1_90, %c1_91, %c0_92, %c0_93] : memref<2x2x8x8x9xf32, #tpu.memory_space<vmem>>, vector<1x1x1x1x9xf32>
    %77 = vector.shape_cast %76 : vector<1x1x1x1x9xf32> to vector<1x9xf32>
    %78 = tpu.concatenate %75, %77 in 0 : vector<7x9xf32>, vector<1x9xf32> -> vector<8x9xf32>
    %cst_94 = arith.constant 2.500000e-01 : f32
    %79 = vector.broadcast %cst_94 : f32 to vector<8x9xf32>
    %80 = arith.mulf %79, %78 : vector<8x9xf32>
    %81 = arith.addf %73, %80 : vector<8x9xf32>
    %82 = vector.extract_strided_slice %64 {offsets = [0, 0], sizes = [8, 8], strides = [1, 1]} : vector<8x9xf32> to vector<8x8xf32>
    %cst_95 = arith.constant 2.500000e-01 : f32
    %83 = vector.broadcast %cst_95 : f32 to vector<8x8xf32>
    %84 = arith.mulf %83, %82 : vector<8x8xf32>
    %85 = vector.extract_strided_slice %81 {offsets = [0, 0], sizes = [8, 8], strides = [1, 1]} : vector<8x9xf32> to vector<8x8xf32>
    %cst_96 = arith.constant 5.000000e-01 : f32
    %86 = vector.broadcast %cst_96 : f32 to vector<8x8xf32>
    %87 = arith.mulf %86, %85 : vector<8x8xf32>
    %88 = arith.addf %84, %87 : vector<8x8xf32>
    %89 = vector.extract_strided_slice %64 {offsets = [0, 1], sizes = [8, 8], strides = [1, 1]} : vector<8x9xf32> to vector<8x8xf32>
    %cst_97 = arith.constant 2.500000e-01 : f32
    %90 = vector.broadcast %cst_97 : f32 to vector<8x8xf32>
    %91 = arith.mulf %90, %89 : vector<8x8xf32>
    %92 = arith.addf %88, %91 : vector<8x8xf32>
    %c1_98 = arith.constant 1 : index
    %c0_99 = arith.constant 0 : index
    %c0_100 = arith.constant 0 : index
    %93 = vector.load %arg4[%c1_98, %c0_99, %c0_100] : memref<8x8x8xf32, #tpu.memory_space<vmem>>, vector<1x8x8xf32>
    %94 = vector.shape_cast %93 : vector<1x8x8xf32> to vector<8x8xf32>
    %95 = vector.shape_cast %92 : vector<8x8xf32> to vector<1x8x8xf32>
    tpu.vector_store %arg4[%c1_98, %c0_99, %c0_100], %95 {strides = array<i32>} : memref<8x8x8xf32, #tpu.memory_space<vmem>>, vector<1x8x8xf32>,
    %c0_101 = arith.constant 0 : index
    %c0_102 = arith.constant 0 : index
    %c2 = arith.constant 2 : index
    %c0_103 = arith.constant 0 : index
    %c0_104 = arith.constant 0 : index
    %96 = vector.load %arg2[%c0_101, %c0_102, %c2, %c0_103, %c0_104] : memref<2x2x8x8x9xf32, #tpu.memory_space<vmem>>, vector<1x1x1x8x9xf32>
    %97 = vector.shape_cast %96 : vector<1x1x1x8x9xf32> to vector<8x9xf32>
    %cst_105 = arith.constant 2.500000e-01 : f32
    %98 = vector.broadcast %cst_105 : f32 to vector<8x9xf32>
    %99 = arith.mulf %98, %97 : vector<8x9xf32>
    %c1_106 = arith.constant 1 : index
    %c0_107 = arith.constant 0 : index
    %c2_108 = arith.constant 2 : index
    %c0_109 = arith.constant 0 : index
    %c0_110 = arith.constant 0 : index
    %100 = vector.load %arg2[%c1_106, %c0_107, %c2_108, %c0_109, %c0_110] : memref<2x2x8x8x9xf32, #tpu.memory_space<vmem>>, vector<1x1x1x8x9xf32>
    %101 = vector.shape_cast %100 : vector<1x1x1x8x9xf32> to vector<8x9xf32>
    %cst_111 = arith.constant 5.000000e-01 : f32
    %102 = vector.broadcast %cst_111 : f32 to vector<8x9xf32>
    %103 = arith.mulf %102, %101 : vector<8x9xf32>
    %104 = arith.addf %99, %103 : vector<8x9xf32>
    %c0_112 = arith.constant 0 : index
    %c0_113 = arith.constant 0 : index
    %c2_114 = arith.constant 2 : index
    %c1_115 = arith.constant 1 : index
    %c0_116 = arith.constant 0 : index
    %105 = vector.load %arg2[%c0_112, %c0_113, %c2_114, %c1_115, %c0_116] : memref<2x2x8x8x9xf32, #tpu.memory_space<vmem>>, vector<1x1x1x7x9xf32>
    %106 = vector.shape_cast %105 : vector<1x1x1x7x9xf32> to vector<7x9xf32>
    %c0_117 = arith.constant 0 : index
    %c0_118 = arith.constant 0 : index
    %c2_119 = arith.constant 2 : index
    %c0_120 = arith.constant 0 : index
    %c0_121 = arith.constant 0 : index
    %107 = vector.load %arg3[%c0_117, %c0_118, %c2_119, %c0_120, %c0_121] : memref<2x2x8x8x9xf32, #tpu.memory_space<vmem>>, vector<1x1x1x1x9xf32>
    %108 = vector.shape_cast %107 : vector<1x1x1x1x9xf32> to vector<1x9xf32>
    %109 = tpu.concatenate %106, %108 in 0 : vector<7x9xf32>, vector<1x9xf32> -> vector<8x9xf32>
    %cst_122 = arith.constant 2.500000e-01 : f32
    %110 = vector.broadcast %cst_122 : f32 to vector<8x9xf32>
    %111 = arith.mulf %110, %109 : vector<8x9xf32>
    %112 = arith.addf %104, %111 : vector<8x9xf32>
    %c0_123 = arith.constant 0 : index
    %c1_124 = arith.constant 1 : index
    %c2_125 = arith.constant 2 : index
    %c0_126 = arith.constant 0 : index
    %c0_127 = arith.constant 0 : index
    %113 = vector.load %arg2[%c0_123, %c1_124, %c2_125, %c0_126, %c0_127] : memref<2x2x8x8x9xf32, #tpu.memory_space<vmem>>, vector<1x1x1x8x9xf32>
    %114 = vector.shape_cast %113 : vector<1x1x1x8x9xf32> to vector<8x9xf32>
    %cst_128 = arith.constant 2.500000e-01 : f32
    %115 = vector.broadcast %cst_128 : f32 to vector<8x9xf32>
    %116 = arith.mulf %115, %114 : vector<8x9xf32>
    %c1_129 = arith.constant 1 : index
    %c1_130 = arith.constant 1 : index
    %c2_131 = arith.constant 2 : index
    %c0_132 = arith.constant 0 : index
    %c0_133 = arith.constant 0 : index
    %117 = vector.load %arg2[%c1_129, %c1_130, %c2_131, %c0_132, %c0_133] : memref<2x2x8x8x9xf32, #tpu.memory_space<vmem>>, vector<1x1x1x8x9xf32>
    %118 = vector.shape_cast %117 : vector<1x1x1x8x9xf32> to vector<8x9xf32>
    %cst_134 = arith.constant 5.000000e-01 : f32
    %119 = vector.broadcast %cst_134 : f32 to vector<8x9xf32>
    %120 = arith.mulf %119, %118 : vector<8x9xf32>
    %121 = arith.addf %116, %120 : vector<8x9xf32>
    %c0_135 = arith.constant 0 : index
    %c1_136 = arith.constant 1 : index
    %c2_137 = arith.constant 2 : index
    %c1_138 = arith.constant 1 : index
    %c0_139 = arith.constant 0 : index
    %122 = vector.load %arg2[%c0_135, %c1_136, %c2_137, %c1_138, %c0_139] : memref<2x2x8x8x9xf32, #tpu.memory_space<vmem>>, vector<1x1x1x7x9xf32>
    %123 = vector.shape_cast %122 : vector<1x1x1x7x9xf32> to vector<7x9xf32>
    %c0_140 = arith.constant 0 : index
    %c1_141 = arith.constant 1 : index
    %c2_142 = arith.constant 2 : index
    %c0_143 = arith.constant 0 : index
    %c0_144 = arith.constant 0 : index
    %124 = vector.load %arg3[%c0_140, %c1_141, %c2_142, %c0_143, %c0_144] : memref<2x2x8x8x9xf32, #tpu.memory_space<vmem>>, vector<1x1x1x1x9xf32>
    %125 = vector.shape_cast %124 : vector<1x1x1x1x9xf32> to vector<1x9xf32>
    %126 = tpu.concatenate %123, %125 in 0 : vector<7x9xf32>, vector<1x9xf32> -> vector<8x9xf32>
    %cst_145 = arith.constant 2.500000e-01 : f32
    %127 = vector.broadcast %cst_145 : f32 to vector<8x9xf32>
    %128 = arith.mulf %127, %126 : vector<8x9xf32>
    %129 = arith.addf %121, %128 : vector<8x9xf32>
    %130 = vector.extract_strided_slice %112 {offsets = [0, 0], sizes = [8, 8], strides = [1, 1]} : vector<8x9xf32> to vector<8x8xf32>
    %cst_146 = arith.constant 2.500000e-01 : f32
    %131 = vector.broadcast %cst_146 : f32 to vector<8x8xf32>
    %132 = arith.mulf %131, %130 : vector<8x8xf32>
    %133 = vector.extract_strided_slice %129 {offsets = [0, 0], sizes = [8, 8], strides = [1, 1]} : vector<8x9xf32> to vector<8x8xf32>
    %cst_147 = arith.constant 5.000000e-01 : f32
    %134 = vector.broadcast %cst_147 : f32 to vector<8x8xf32>
    %135 = arith.mulf %134, %133 : vector<8x8xf32>
    %136 = arith.addf %132, %135 : vector<8x8xf32>
    %137 = vector.extract_strided_slice %112 {offsets = [0, 1], sizes = [8, 8], strides = [1, 1]} : vector<8x9xf32> to vector<8x8xf32>
    %cst_148 = arith.constant 2.500000e-01 : f32
    %138 = vector.broadcast %cst_148 : f32 to vector<8x8xf32>
    %139 = arith.mulf %138, %137 : vector<8x8xf32>
    %140 = arith.addf %136, %139 : vector<8x8xf32>
    %c2_149 = arith.constant 2 : index
    %c0_150 = arith.constant 0 : index
    %c0_151 = arith.constant 0 : index
    %141 = vector.load %arg4[%c2_149, %c0_150, %c0_151] : memref<8x8x8xf32, #tpu.memory_space<vmem>>, vector<1x8x8xf32>
    %142 = vector.shape_cast %141 : vector<1x8x8xf32> to vector<8x8xf32>
    %143 = vector.shape_cast %140 : vector<8x8xf32> to vector<1x8x8xf32>
    tpu.vector_store %arg4[%c2_149, %c0_150, %c0_151], %143 {strides = array<i32>} : memref<8x8x8xf32, #tpu.memory_space<vmem>>, vector<1x8x8xf32>,
    %c0_152 = arith.constant 0 : index
    %c0_153 = arith.constant 0 : index
    %c3 = arith.constant 3 : index
    %c0_154 = arith.constant 0 : index
    %c0_155 = arith.constant 0 : index
    %144 = vector.load %arg2[%c0_152, %c0_153, %c3, %c0_154, %c0_155] : memref<2x2x8x8x9xf32, #tpu.memory_space<vmem>>, vector<1x1x1x8x9xf32>
    %145 = vector.shape_cast %144 : vector<1x1x1x8x9xf32> to vector<8x9xf32>
    %cst_156 = arith.constant 2.500000e-01 : f32
    %146 = vector.broadcast %cst_156 : f32 to vector<8x9xf32>
    %147 = arith.mulf %146, %145 : vector<8x9xf32>
    %c1_157 = arith.constant 1 : index
    %c0_158 = arith.constant 0 : index
    %c3_159 = arith.constant 3 : index
    %c0_160 = arith.constant 0 : index
    %c0_161 = arith.constant 0 : index
    %148 = vector.load %arg2[%c1_157, %c0_158, %c3_159, %c0_160, %c0_161] : memref<2x2x8x8x9xf32, #tpu.memory_space<vmem>>, vector<1x1x1x8x9xf32>
    %149 = vector.shape_cast %148 : vector<1x1x1x8x9xf32> to vector<8x9xf32>
    %cst_162 = arith.constant 5.000000e-01 : f32
    %150 = vector.broadcast %cst_162 : f32 to vector<8x9xf32>
    %151 = arith.mulf %150, %149 : vector<8x9xf32>
    %152 = arith.addf %147, %151 : vector<8x9xf32>
    %c0_163 = arith.constant 0 : index
    %c0_164 = arith.constant 0 : index
    %c3_165 = arith.constant 3 : index
    %c1_166 = arith.constant 1 : index
    %c0_167 = arith.constant 0 : index
    %153 = vector.load %arg2[%c0_163, %c0_164, %c3_165, %c1_166, %c0_167] : memref<2x2x8x8x9xf32, #tpu.memory_space<vmem>>, vector<1x1x1x7x9xf32>
    %154 = vector.shape_cast %153 : vector<1x1x1x7x9xf32> to vector<7x9xf32>
    %c0_168 = arith.constant 0 : index
    %c0_169 = arith.constant 0 : index
    %c3_170 = arith.constant 3 : index
    %c0_171 = arith.constant 0 : index
    %c0_172 = arith.constant 0 : index
    %155 = vector.load %arg3[%c0_168, %c0_169, %c3_170, %c0_171, %c0_172] : memref<2x2x8x8x9xf32, #tpu.memory_space<vmem>>, vector<1x1x1x1x9xf32>
    %156 = vector.shape_cast %155 : vector<1x1x1x1x9xf32> to vector<1x9xf32>
    %157 = tpu.concatenate %154, %156 in 0 : vector<7x9xf32>, vector<1x9xf32> -> vector<8x9xf32>
    %cst_173 = arith.constant 2.500000e-01 : f32
    %158 = vector.broadcast %cst_173 : f32 to vector<8x9xf32>
    %159 = arith.mulf %158, %157 : vector<8x9xf32>
    %160 = arith.addf %152, %159 : vector<8x9xf32>
    %c0_174 = arith.constant 0 : index
    %c1_175 = arith.constant 1 : index
    %c3_176 = arith.constant 3 : index
    %c0_177 = arith.constant 0 : index
    %c0_178 = arith.constant 0 : index
    %161 = vector.load %arg2[%c0_174, %c1_175, %c3_176, %c0_177, %c0_178] : memref<2x2x8x8x9xf32, #tpu.memory_space<vmem>>, vector<1x1x1x8x9xf32>
    %162 = vector.shape_cast %161 : vector<1x1x1x8x9xf32> to vector<8x9xf32>
    %cst_179 = arith.constant 2.500000e-01 : f32
    %163 = vector.broadcast %cst_179 : f32 to vector<8x9xf32>
    %164 = arith.mulf %163, %162 : vector<8x9xf32>
    %c1_180 = arith.constant 1 : index
    %c1_181 = arith.constant 1 : index
    %c3_182 = arith.constant 3 : index
    %c0_183 = arith.constant 0 : index
    %c0_184 = arith.constant 0 : index
    %165 = vector.load %arg2[%c1_180, %c1_181, %c3_182, %c0_183, %c0_184] : memref<2x2x8x8x9xf32, #tpu.memory_space<vmem>>, vector<1x1x1x8x9xf32>
    %166 = vector.shape_cast %165 : vector<1x1x1x8x9xf32> to vector<8x9xf32>
    %cst_185 = arith.constant 5.000000e-01 : f32
    %167 = vector.broadcast %cst_185 : f32 to vector<8x9xf32>
    %168 = arith.mulf %167, %166 : vector<8x9xf32>
    %169 = arith.addf %164, %168 : vector<8x9xf32>
    %c0_186 = arith.constant 0 : index
    %c1_187 = arith.constant 1 : index
    %c3_188 = arith.constant 3 : index
    %c1_189 = arith.constant 1 : index
    %c0_190 = arith.constant 0 : index
    %170 = vector.load %arg2[%c0_186, %c1_187, %c3_188, %c1_189, %c0_190] : memref<2x2x8x8x9xf32, #tpu.memory_space<vmem>>, vector<1x1x1x7x9xf32>
    %171 = vector.shape_cast %170 : vector<1x1x1x7x9xf32> to vector<7x9xf32>
    %c0_191 = arith.constant 0 : index
    %c1_192 = arith.constant 1 : index
    %c3_193 = arith.constant 3 : index
    %c0_194 = arith.constant 0 : index
    %c0_195 = arith.constant 0 : index
    %172 = vector.load %arg3[%c0_191, %c1_192, %c3_193, %c0_194, %c0_195] : memref<2x2x8x8x9xf32, #tpu.memory_space<vmem>>, vector<1x1x1x1x9xf32>
    %173 = vector.shape_cast %172 : vector<1x1x1x1x9xf32> to vector<1x9xf32>
    %174 = tpu.concatenate %171, %173 in 0 : vector<7x9xf32>, vector<1x9xf32> -> vector<8x9xf32>
    %cst_196 = arith.constant 2.500000e-01 : f32
    %175 = vector.broadcast %cst_196 : f32 to vector<8x9xf32>
    %176 = arith.mulf %175, %174 : vector<8x9xf32>
    %177 = arith.addf %169, %176 : vector<8x9xf32>
    %178 = vector.extract_strided_slice %160 {offsets = [0, 0], sizes = [8, 8], strides = [1, 1]} : vector<8x9xf32> to vector<8x8xf32>
    %cst_197 = arith.constant 2.500000e-01 : f32
    %179 = vector.broadcast %cst_197 : f32 to vector<8x8xf32>
    %180 = arith.mulf %179, %178 : vector<8x8xf32>
    %181 = vector.extract_strided_slice %177 {offsets = [0, 0], sizes = [8, 8], strides = [1, 1]} : vector<8x9xf32> to vector<8x8xf32>
    %cst_198 = arith.constant 5.000000e-01 : f32
    %182 = vector.broadcast %cst_198 : f32 to vector<8x8xf32>
    %183 = arith.mulf %182, %181 : vector<8x8xf32>
    %184 = arith.addf %180, %183 : vector<8x8xf32>
    %185 = vector.extract_strided_slice %160 {offsets = [0, 1], sizes = [8, 8], strides = [1, 1]} : vector<8x9xf32> to vector<8x8xf32>
    %cst_199 = arith.constant 2.500000e-01 : f32
    %186 = vector.broadcast %cst_199 : f32 to vector<8x8xf32>
    %187 = arith.mulf %186, %185 : vector<8x8xf32>
    %188 = arith.addf %184, %187 : vector<8x8xf32>
    %c3_200 = arith.constant 3 : index
    %c0_201 = arith.constant 0 : index
    %c0_202 = arith.constant 0 : index
    %189 = vector.load %arg4[%c3_200, %c0_201, %c0_202] : memref<8x8x8xf32, #tpu.memory_space<vmem>>, vector<1x8x8xf32>
    %190 = vector.shape_cast %189 : vector<1x8x8xf32> to vector<8x8xf32>
    %191 = vector.shape_cast %188 : vector<8x8xf32> to vector<1x8x8xf32>
    tpu.vector_store %arg4[%c3_200, %c0_201, %c0_202], %191 {strides = array<i32>} : memref<8x8x8xf32, #tpu.memory_space<vmem>>, vector<1x8x8xf32>,
    %c0_203 = arith.constant 0 : index
    %c0_204 = arith.constant 0 : index
    %c4 = arith.constant 4 : index
    %c0_205 = arith.constant 0 : index
    %c0_206 = arith.constant 0 : index
    %192 = vector.load %arg2[%c0_203, %c0_204, %c4, %c0_205, %c0_206] : memref<2x2x8x8x9xf32, #tpu.memory_space<vmem>>, vector<1x1x1x8x9xf32>
    %193 = vector.shape_cast %192 : vector<1x1x1x8x9xf32> to vector<8x9xf32>
    %cst_207 = arith.constant 2.500000e-01 : f32
    %194 = vector.broadcast %cst_207 : f32 to vector<8x9xf32>
    %195 = arith.mulf %194, %193 : vector<8x9xf32>
    %c1_208 = arith.constant 1 : index
    %c0_209 = arith.constant 0 : index
    %c4_210 = arith.constant 4 : index
    %c0_211 = arith.constant 0 : index
    %c0_212 = arith.constant 0 : index
    %196 = vector.load %arg2[%c1_208, %c0_209, %c4_210, %c0_211, %c0_212] : memref<2x2x8x8x9xf32, #tpu.memory_space<vmem>>, vector<1x1x1x8x9xf32>
    %197 = vector.shape_cast %196 : vector<1x1x1x8x9xf32> to vector<8x9xf32>
    %cst_213 = arith.constant 5.000000e-01 : f32
    %198 = vector.broadcast %cst_213 : f32 to vector<8x9xf32>
    %199 = arith.mulf %198, %197 : vector<8x9xf32>
    %200 = arith.addf %195, %199 : vector<8x9xf32>
    %c0_214 = arith.constant 0 : index
    %c0_215 = arith.constant 0 : index
    %c4_216 = arith.constant 4 : index
    %c1_217 = arith.constant 1 : index
    %c0_218 = arith.constant 0 : index
    %201 = vector.load %arg2[%c0_214, %c0_215, %c4_216, %c1_217, %c0_218] : memref<2x2x8x8x9xf32, #tpu.memory_space<vmem>>, vector<1x1x1x7x9xf32>
    %202 = vector.shape_cast %201 : vector<1x1x1x7x9xf32> to vector<7x9xf32>
    %c0_219 = arith.constant 0 : index
    %c0_220 = arith.constant 0 : index
    %c4_221 = arith.constant 4 : index
    %c0_222 = arith.constant 0 : index
    %c0_223 = arith.constant 0 : index
    %203 = vector.load %arg3[%c0_219, %c0_220, %c4_221, %c0_222, %c0_223] : memref<2x2x8x8x9xf32, #tpu.memory_space<vmem>>, vector<1x1x1x1x9xf32>
    %204 = vector.shape_cast %203 : vector<1x1x1x1x9xf32> to vector<1x9xf32>
    %205 = tpu.concatenate %202, %204 in 0 : vector<7x9xf32>, vector<1x9xf32> -> vector<8x9xf32>
    %cst_224 = arith.constant 2.500000e-01 : f32
    %206 = vector.broadcast %cst_224 : f32 to vector<8x9xf32>
    %207 = arith.mulf %206, %205 : vector<8x9xf32>
    %208 = arith.addf %200, %207 : vector<8x9xf32>
    %c0_225 = arith.constant 0 : index
    %c1_226 = arith.constant 1 : index
    %c4_227 = arith.constant 4 : index
    %c0_228 = arith.constant 0 : index
    %c0_229 = arith.constant 0 : index
    %209 = vector.load %arg2[%c0_225, %c1_226, %c4_227, %c0_228, %c0_229] : memref<2x2x8x8x9xf32, #tpu.memory_space<vmem>>, vector<1x1x1x8x9xf32>
    %210 = vector.shape_cast %209 : vector<1x1x1x8x9xf32> to vector<8x9xf32>
    %cst_230 = arith.constant 2.500000e-01 : f32
    %211 = vector.broadcast %cst_230 : f32 to vector<8x9xf32>
    %212 = arith.mulf %211, %210 : vector<8x9xf32>
    %c1_231 = arith.constant 1 : index
    %c1_232 = arith.constant 1 : index
    %c4_233 = arith.constant 4 : index
    %c0_234 = arith.constant 0 : index
    %c0_235 = arith.constant 0 : index
    %213 = vector.load %arg2[%c1_231, %c1_232, %c4_233, %c0_234, %c0_235] : memref<2x2x8x8x9xf32, #tpu.memory_space<vmem>>, vector<1x1x1x8x9xf32>
    %214 = vector.shape_cast %213 : vector<1x1x1x8x9xf32> to vector<8x9xf32>
    %cst_236 = arith.constant 5.000000e-01 : f32
    %215 = vector.broadcast %cst_236 : f32 to vector<8x9xf32>
    %216 = arith.mulf %215, %214 : vector<8x9xf32>
    %217 = arith.addf %212, %216 : vector<8x9xf32>
    %c0_237 = arith.constant 0 : index
    %c1_238 = arith.constant 1 : index
    %c4_239 = arith.constant 4 : index
    %c1_240 = arith.constant 1 : index
    %c0_241 = arith.constant 0 : index
    %218 = vector.load %arg2[%c0_237, %c1_238, %c4_239, %c1_240, %c0_241] : memref<2x2x8x8x9xf32, #tpu.memory_space<vmem>>, vector<1x1x1x7x9xf32>
    %219 = vector.shape_cast %218 : vector<1x1x1x7x9xf32> to vector<7x9xf32>
    %c0_242 = arith.constant 0 : index
    %c1_243 = arith.constant 1 : index
    %c4_244 = arith.constant 4 : index
    %c0_245 = arith.constant 0 : index
    %c0_246 = arith.constant 0 : index
    %220 = vector.load %arg3[%c0_242, %c1_243, %c4_244, %c0_245, %c0_246] : memref<2x2x8x8x9xf32, #tpu.memory_space<vmem>>, vector<1x1x1x1x9xf32>
    %221 = vector.shape_cast %220 : vector<1x1x1x1x9xf32> to vector<1x9xf32>
    %222 = tpu.concatenate %219, %221 in 0 : vector<7x9xf32>, vector<1x9xf32> -> vector<8x9xf32>
    %cst_247 = arith.constant 2.500000e-01 : f32
    %223 = vector.broadcast %cst_247 : f32 to vector<8x9xf32>
    %224 = arith.mulf %223, %222 : vector<8x9xf32>
    %225 = arith.addf %217, %224 : vector<8x9xf32>
    %226 = vector.extract_strided_slice %208 {offsets = [0, 0], sizes = [8, 8], strides = [1, 1]} : vector<8x9xf32> to vector<8x8xf32>
    %cst_248 = arith.constant 2.500000e-01 : f32
    %227 = vector.broadcast %cst_248 : f32 to vector<8x8xf32>
    %228 = arith.mulf %227, %226 : vector<8x8xf32>
    %229 = vector.extract_strided_slice %225 {offsets = [0, 0], sizes = [8, 8], strides = [1, 1]} : vector<8x9xf32> to vector<8x8xf32>
    %cst_249 = arith.constant 5.000000e-01 : f32
    %230 = vector.broadcast %cst_249 : f32 to vector<8x8xf32>
    %231 = arith.mulf %230, %229 : vector<8x8xf32>
    %232 = arith.addf %228, %231 : vector<8x8xf32>
    %233 = vector.extract_strided_slice %208 {offsets = [0, 1], sizes = [8, 8], strides = [1, 1]} : vector<8x9xf32> to vector<8x8xf32>
    %cst_250 = arith.constant 2.500000e-01 : f32
    %234 = vector.broadcast %cst_250 : f32 to vector<8x8xf32>
    %235 = arith.mulf %234, %233 : vector<8x8xf32>
    %236 = arith.addf %232, %235 : vector<8x8xf32>
    %c4_251 = arith.constant 4 : index
    %c0_252 = arith.constant 0 : index
    %c0_253 = arith.constant 0 : index
    %237 = vector.load %arg4[%c4_251, %c0_252, %c0_253] : memref<8x8x8xf32, #tpu.memory_space<vmem>>, vector<1x8x8xf32>
    %238 = vector.shape_cast %237 : vector<1x8x8xf32> to vector<8x8xf32>
    %239 = vector.shape_cast %236 : vector<8x8xf32> to vector<1x8x8xf32>
    tpu.vector_store %arg4[%c4_251, %c0_252, %c0_253], %239 {strides = array<i32>} : memref<8x8x8xf32, #tpu.memory_space<vmem>>, vector<1x8x8xf32>,
    %c0_254 = arith.constant 0 : index
    %c0_255 = arith.constant 0 : index
    %c5 = arith.constant 5 : index
    %c0_256 = arith.constant 0 : index
    %c0_257 = arith.constant 0 : index
    %240 = vector.load %arg2[%c0_254, %c0_255, %c5, %c0_256, %c0_257] : memref<2x2x8x8x9xf32, #tpu.memory_space<vmem>>, vector<1x1x1x8x9xf32>
    %241 = vector.shape_cast %240 : vector<1x1x1x8x9xf32> to vector<8x9xf32>
    %cst_258 = arith.constant 2.500000e-01 : f32
    %242 = vector.broadcast %cst_258 : f32 to vector<8x9xf32>
    %243 = arith.mulf %242, %241 : vector<8x9xf32>
    %c1_259 = arith.constant 1 : index
    %c0_260 = arith.constant 0 : index
    %c5_261 = arith.constant 5 : index
    %c0_262 = arith.constant 0 : index
    %c0_263 = arith.constant 0 : index
    %244 = vector.load %arg2[%c1_259, %c0_260, %c5_261, %c0_262, %c0_263] : memref<2x2x8x8x9xf32, #tpu.memory_space<vmem>>, vector<1x1x1x8x9xf32>
    %245 = vector.shape_cast %244 : vector<1x1x1x8x9xf32> to vector<8x9xf32>
    %cst_264 = arith.constant 5.000000e-01 : f32
    %246 = vector.broadcast %cst_264 : f32 to vector<8x9xf32>
    %247 = arith.mulf %246, %245 : vector<8x9xf32>
    %248 = arith.addf %243, %247 : vector<8x9xf32>
    %c0_265 = arith.constant 0 : index
    %c0_266 = arith.constant 0 : index
    %c5_267 = arith.constant 5 : index
    %c1_268 = arith.constant 1 : index
    %c0_269 = arith.constant 0 : index
    %249 = vector.load %arg2[%c0_265, %c0_266, %c5_267, %c1_268, %c0_269] : memref<2x2x8x8x9xf32, #tpu.memory_space<vmem>>, vector<1x1x1x7x9xf32>
    %250 = vector.shape_cast %249 : vector<1x1x1x7x9xf32> to vector<7x9xf32>
    %c0_270 = arith.constant 0 : index
    %c0_271 = arith.constant 0 : index
    %c5_272 = arith.constant 5 : index
    %c0_273 = arith.constant 0 : index
    %c0_274 = arith.constant 0 : index
    %251 = vector.load %arg3[%c0_270, %c0_271, %c5_272, %c0_273, %c0_274] : memref<2x2x8x8x9xf32, #tpu.memory_space<vmem>>, vector<1x1x1x1x9xf32>
    %252 = vector.shape_cast %251 : vector<1x1x1x1x9xf32> to vector<1x9xf32>
    %253 = tpu.concatenate %250, %252 in 0 : vector<7x9xf32>, vector<1x9xf32> -> vector<8x9xf32>
    %cst_275 = arith.constant 2.500000e-01 : f32
    %254 = vector.broadcast %cst_275 : f32 to vector<8x9xf32>
    %255 = arith.mulf %254, %253 : vector<8x9xf32>
    %256 = arith.addf %248, %255 : vector<8x9xf32>
    %c0_276 = arith.constant 0 : index
    %c1_277 = arith.constant 1 : index
    %c5_278 = arith.constant 5 : index
    %c0_279 = arith.constant 0 : index
    %c0_280 = arith.constant 0 : index
    %257 = vector.load %arg2[%c0_276, %c1_277, %c5_278, %c0_279, %c0_280] : memref<2x2x8x8x9xf32, #tpu.memory_space<vmem>>, vector<1x1x1x8x9xf32>
    %258 = vector.shape_cast %257 : vector<1x1x1x8x9xf32> to vector<8x9xf32>
    %cst_281 = arith.constant 2.500000e-01 : f32
    %259 = vector.broadcast %cst_281 : f32 to vector<8x9xf32>
    %260 = arith.mulf %259, %258 : vector<8x9xf32>
    %c1_282 = arith.constant 1 : index
    %c1_283 = arith.constant 1 : index
    %c5_284 = arith.constant 5 : index
    %c0_285 = arith.constant 0 : index
    %c0_286 = arith.constant 0 : index
    %261 = vector.load %arg2[%c1_282, %c1_283, %c5_284, %c0_285, %c0_286] : memref<2x2x8x8x9xf32, #tpu.memory_space<vmem>>, vector<1x1x1x8x9xf32>
    %262 = vector.shape_cast %261 : vector<1x1x1x8x9xf32> to vector<8x9xf32>
    %cst_287 = arith.constant 5.000000e-01 : f32
    %263 = vector.broadcast %cst_287 : f32 to vector<8x9xf32>
    %264 = arith.mulf %263, %262 : vector<8x9xf32>
    %265 = arith.addf %260, %264 : vector<8x9xf32>
    %c0_288 = arith.constant 0 : index
    %c1_289 = arith.constant 1 : index
    %c5_290 = arith.constant 5 : index
    %c1_291 = arith.constant 1 : index
    %c0_292 = arith.constant 0 : index
    %266 = vector.load %arg2[%c0_288, %c1_289, %c5_290, %c1_291, %c0_292] : memref<2x2x8x8x9xf32, #tpu.memory_space<vmem>>, vector<1x1x1x7x9xf32>
    %267 = vector.shape_cast %266 : vector<1x1x1x7x9xf32> to vector<7x9xf32>
    %c0_293 = arith.constant 0 : index
    %c1_294 = arith.constant 1 : index
    %c5_295 = arith.constant 5 : index
    %c0_296 = arith.constant 0 : index
    %c0_297 = arith.constant 0 : index
    %268 = vector.load %arg3[%c0_293, %c1_294, %c5_295, %c0_296, %c0_297] : memref<2x2x8x8x9xf32, #tpu.memory_space<vmem>>, vector<1x1x1x1x9xf32>
    %269 = vector.shape_cast %268 : vector<1x1x1x1x9xf32> to vector<1x9xf32>
    %270 = tpu.concatenate %267, %269 in 0 : vector<7x9xf32>, vector<1x9xf32> -> vector<8x9xf32>
    %cst_298 = arith.constant 2.500000e-01 : f32
    %271 = vector.broadcast %cst_298 : f32 to vector<8x9xf32>
    %272 = arith.mulf %271, %270 : vector<8x9xf32>
    %273 = arith.addf %265, %272 : vector<8x9xf32>
    %274 = vector.extract_strided_slice %256 {offsets = [0, 0], sizes = [8, 8], strides = [1, 1]} : vector<8x9xf32> to vector<8x8xf32>
    %cst_299 = arith.constant 2.500000e-01 : f32
    %275 = vector.broadcast %cst_299 : f32 to vector<8x8xf32>
    %276 = arith.mulf %275, %274 : vector<8x8xf32>
    %277 = vector.extract_strided_slice %273 {offsets = [0, 0], sizes = [8, 8], strides = [1, 1]} : vector<8x9xf32> to vector<8x8xf32>
    %cst_300 = arith.constant 5.000000e-01 : f32
    %278 = vector.broadcast %cst_300 : f32 to vector<8x8xf32>
    %279 = arith.mulf %278, %277 : vector<8x8xf32>
    %280 = arith.addf %276, %279 : vector<8x8xf32>
    %281 = vector.extract_strided_slice %256 {offsets = [0, 1], sizes = [8, 8], strides = [1, 1]} : vector<8x9xf32> to vector<8x8xf32>
    %cst_301 = arith.constant 2.500000e-01 : f32
    %282 = vector.broadcast %cst_301 : f32 to vector<8x8xf32>
    %283 = arith.mulf %282, %281 : vector<8x8xf32>
    %284 = arith.addf %280, %283 : vector<8x8xf32>
    %c5_302 = arith.constant 5 : index
    %c0_303 = arith.constant 0 : index
    %c0_304 = arith.constant 0 : index
    %285 = vector.load %arg4[%c5_302, %c0_303, %c0_304] : memref<8x8x8xf32, #tpu.memory_space<vmem>>, vector<1x8x8xf32>
    %286 = vector.shape_cast %285 : vector<1x8x8xf32> to vector<8x8xf32>
    %287 = vector.shape_cast %284 : vector<8x8xf32> to vector<1x8x8xf32>
    tpu.vector_store %arg4[%c5_302, %c0_303, %c0_304], %287 {strides = array<i32>} : memref<8x8x8xf32, #tpu.memory_space<vmem>>, vector<1x8x8xf32>,
    %c0_305 = arith.constant 0 : index
    %c0_306 = arith.constant 0 : index
    %c6 = arith.constant 6 : index
    %c0_307 = arith.constant 0 : index
    %c0_308 = arith.constant 0 : index
    %288 = vector.load %arg2[%c0_305, %c0_306, %c6, %c0_307, %c0_308] : memref<2x2x8x8x9xf32, #tpu.memory_space<vmem>>, vector<1x1x1x8x9xf32>
    %289 = vector.shape_cast %288 : vector<1x1x1x8x9xf32> to vector<8x9xf32>
    %cst_309 = arith.constant 2.500000e-01 : f32
    %290 = vector.broadcast %cst_309 : f32 to vector<8x9xf32>
    %291 = arith.mulf %290, %289 : vector<8x9xf32>
    %c1_310 = arith.constant 1 : index
    %c0_311 = arith.constant 0 : index
    %c6_312 = arith.constant 6 : index
    %c0_313 = arith.constant 0 : index
    %c0_314 = arith.constant 0 : index
    %292 = vector.load %arg2[%c1_310, %c0_311, %c6_312, %c0_313, %c0_314] : memref<2x2x8x8x9xf32, #tpu.memory_space<vmem>>, vector<1x1x1x8x9xf32>
    %293 = vector.shape_cast %292 : vector<1x1x1x8x9xf32> to vector<8x9xf32>
    %cst_315 = arith.constant 5.000000e-01 : f32
    %294 = vector.broadcast %cst_315 : f32 to vector<8x9xf32>
    %295 = arith.mulf %294, %293 : vector<8x9xf32>
    %296 = arith.addf %291, %295 : vector<8x9xf32>
    %c0_316 = arith.constant 0 : index
    %c0_317 = arith.constant 0 : index
    %c6_318 = arith.constant 6 : index
    %c1_319 = arith.constant 1 : index
    %c0_320 = arith.constant 0 : index
    %297 = vector.load %arg2[%c0_316, %c0_317, %c6_318, %c1_319, %c0_320] : memref<2x2x8x8x9xf32, #tpu.memory_space<vmem>>, vector<1x1x1x7x9xf32>
    %298 = vector.shape_cast %297 : vector<1x1x1x7x9xf32> to vector<7x9xf32>
    %c0_321 = arith.constant 0 : index
    %c0_322 = arith.constant 0 : index
    %c6_323 = arith.constant 6 : index
    %c0_324 = arith.constant 0 : index
    %c0_325 = arith.constant 0 : index
    %299 = vector.load %arg3[%c0_321, %c0_322, %c6_323, %c0_324, %c0_325] : memref<2x2x8x8x9xf32, #tpu.memory_space<vmem>>, vector<1x1x1x1x9xf32>
    %300 = vector.shape_cast %299 : vector<1x1x1x1x9xf32> to vector<1x9xf32>
    %301 = tpu.concatenate %298, %300 in 0 : vector<7x9xf32>, vector<1x9xf32> -> vector<8x9xf32>
    %cst_326 = arith.constant 2.500000e-01 : f32
    %302 = vector.broadcast %cst_326 : f32 to vector<8x9xf32>
    %303 = arith.mulf %302, %301 : vector<8x9xf32>
    %304 = arith.addf %296, %303 : vector<8x9xf32>
    %c0_327 = arith.constant 0 : index
    %c1_328 = arith.constant 1 : index
    %c6_329 = arith.constant 6 : index
    %c0_330 = arith.constant 0 : index
    %c0_331 = arith.constant 0 : index
    %305 = vector.load %arg2[%c0_327, %c1_328, %c6_329, %c0_330, %c0_331] : memref<2x2x8x8x9xf32, #tpu.memory_space<vmem>>, vector<1x1x1x8x9xf32>
    %306 = vector.shape_cast %305 : vector<1x1x1x8x9xf32> to vector<8x9xf32>
    %cst_332 = arith.constant 2.500000e-01 : f32
    %307 = vector.broadcast %cst_332 : f32 to vector<8x9xf32>
    %308 = arith.mulf %307, %306 : vector<8x9xf32>
    %c1_333 = arith.constant 1 : index
    %c1_334 = arith.constant 1 : index
    %c6_335 = arith.constant 6 : index
    %c0_336 = arith.constant 0 : index
    %c0_337 = arith.constant 0 : index
    %309 = vector.load %arg2[%c1_333, %c1_334, %c6_335, %c0_336, %c0_337] : memref<2x2x8x8x9xf32, #tpu.memory_space<vmem>>, vector<1x1x1x8x9xf32>
    %310 = vector.shape_cast %309 : vector<1x1x1x8x9xf32> to vector<8x9xf32>
    %cst_338 = arith.constant 5.000000e-01 : f32
    %311 = vector.broadcast %cst_338 : f32 to vector<8x9xf32>
    %312 = arith.mulf %311, %310 : vector<8x9xf32>
    %313 = arith.addf %308, %312 : vector<8x9xf32>
    %c0_339 = arith.constant 0 : index
    %c1_340 = arith.constant 1 : index
    %c6_341 = arith.constant 6 : index
    %c1_342 = arith.constant 1 : index
    %c0_343 = arith.constant 0 : index
    %314 = vector.load %arg2[%c0_339, %c1_340, %c6_341, %c1_342, %c0_343] : memref<2x2x8x8x9xf32, #tpu.memory_space<vmem>>, vector<1x1x1x7x9xf32>
    %315 = vector.shape_cast %314 : vector<1x1x1x7x9xf32> to vector<7x9xf32>
    %c0_344 = arith.constant 0 : index
    %c1_345 = arith.constant 1 : index
    %c6_346 = arith.constant 6 : index
    %c0_347 = arith.constant 0 : index
    %c0_348 = arith.constant 0 : index
    %316 = vector.load %arg3[%c0_344, %c1_345, %c6_346, %c0_347, %c0_348] : memref<2x2x8x8x9xf32, #tpu.memory_space<vmem>>, vector<1x1x1x1x9xf32>
    %317 = vector.shape_cast %316 : vector<1x1x1x1x9xf32> to vector<1x9xf32>
    %318 = tpu.concatenate %315, %317 in 0 : vector<7x9xf32>, vector<1x9xf32> -> vector<8x9xf32>
    %cst_349 = arith.constant 2.500000e-01 : f32
    %319 = vector.broadcast %cst_349 : f32 to vector<8x9xf32>
    %320 = arith.mulf %319, %318 : vector<8x9xf32>
    %321 = arith.addf %313, %320 : vector<8x9xf32>
    %322 = vector.extract_strided_slice %304 {offsets = [0, 0], sizes = [8, 8], strides = [1, 1]} : vector<8x9xf32> to vector<8x8xf32>
    %cst_350 = arith.constant 2.500000e-01 : f32
    %323 = vector.broadcast %cst_350 : f32 to vector<8x8xf32>
    %324 = arith.mulf %323, %322 : vector<8x8xf32>
    %325 = vector.extract_strided_slice %321 {offsets = [0, 0], sizes = [8, 8], strides = [1, 1]} : vector<8x9xf32> to vector<8x8xf32>
    %cst_351 = arith.constant 5.000000e-01 : f32
    %326 = vector.broadcast %cst_351 : f32 to vector<8x8xf32>
    %327 = arith.mulf %326, %325 : vector<8x8xf32>
    %328 = arith.addf %324, %327 : vector<8x8xf32>
    %329 = vector.extract_strided_slice %304 {offsets = [0, 1], sizes = [8, 8], strides = [1, 1]} : vector<8x9xf32> to vector<8x8xf32>
    %cst_352 = arith.constant 2.500000e-01 : f32
    %330 = vector.broadcast %cst_352 : f32 to vector<8x8xf32>
    %331 = arith.mulf %330, %329 : vector<8x8xf32>
    %332 = arith.addf %328, %331 : vector<8x8xf32>
    %c6_353 = arith.constant 6 : index
    %c0_354 = arith.constant 0 : index
    %c0_355 = arith.constant 0 : index
    %333 = vector.load %arg4[%c6_353, %c0_354, %c0_355] : memref<8x8x8xf32, #tpu.memory_space<vmem>>, vector<1x8x8xf32>
    %334 = vector.shape_cast %333 : vector<1x8x8xf32> to vector<8x8xf32>
    %335 = vector.shape_cast %332 : vector<8x8xf32> to vector<1x8x8xf32>
    tpu.vector_store %arg4[%c6_353, %c0_354, %c0_355], %335 {strides = array<i32>} : memref<8x8x8xf32, #tpu.memory_space<vmem>>, vector<1x8x8xf32>,
    %c0_356 = arith.constant 0 : index
    %c0_357 = arith.constant 0 : index
    %c7 = arith.constant 7 : index
    %c0_358 = arith.constant 0 : index
    %c0_359 = arith.constant 0 : index
    %336 = vector.load %arg2[%c0_356, %c0_357, %c7, %c0_358, %c0_359] : memref<2x2x8x8x9xf32, #tpu.memory_space<vmem>>, vector<1x1x1x8x9xf32>
    %337 = vector.shape_cast %336 : vector<1x1x1x8x9xf32> to vector<8x9xf32>
    %cst_360 = arith.constant 2.500000e-01 : f32
    %338 = vector.broadcast %cst_360 : f32 to vector<8x9xf32>
    %339 = arith.mulf %338, %337 : vector<8x9xf32>
    %c1_361 = arith.constant 1 : index
    %c0_362 = arith.constant 0 : index
    %c7_363 = arith.constant 7 : index
    %c0_364 = arith.constant 0 : index
    %c0_365 = arith.constant 0 : index
    %340 = vector.load %arg2[%c1_361, %c0_362, %c7_363, %c0_364, %c0_365] : memref<2x2x8x8x9xf32, #tpu.memory_space<vmem>>, vector<1x1x1x8x9xf32>
    %341 = vector.shape_cast %340 : vector<1x1x1x8x9xf32> to vector<8x9xf32>
    %cst_366 = arith.constant 5.000000e-01 : f32
    %342 = vector.broadcast %cst_366 : f32 to vector<8x9xf32>
    %343 = arith.mulf %342, %341 : vector<8x9xf32>
    %344 = arith.addf %339, %343 : vector<8x9xf32>
    %c0_367 = arith.constant 0 : index
    %c0_368 = arith.constant 0 : index
    %c7_369 = arith.constant 7 : index
    %c1_370 = arith.constant 1 : index
    %c0_371 = arith.constant 0 : index
    %345 = vector.load %arg2[%c0_367, %c0_368, %c7_369, %c1_370, %c0_371] : memref<2x2x8x8x9xf32, #tpu.memory_space<vmem>>, vector<1x1x1x7x9xf32>
    %346 = vector.shape_cast %345 : vector<1x1x1x7x9xf32> to vector<7x9xf32>
    %c0_372 = arith.constant 0 : index
    %c0_373 = arith.constant 0 : index
    %c7_374 = arith.constant 7 : index
    %c0_375 = arith.constant 0 : index
    %c0_376 = arith.constant 0 : index
    %347 = vector.load %arg3[%c0_372, %c0_373, %c7_374, %c0_375, %c0_376] : memref<2x2x8x8x9xf32, #tpu.memory_space<vmem>>, vector<1x1x1x1x9xf32>
    %348 = vector.shape_cast %347 : vector<1x1x1x1x9xf32> to vector<1x9xf32>
    %349 = tpu.concatenate %346, %348 in 0 : vector<7x9xf32>, vector<1x9xf32> -> vector<8x9xf32>
    %cst_377 = arith.constant 2.500000e-01 : f32
    %350 = vector.broadcast %cst_377 : f32 to vector<8x9xf32>
    %351 = arith.mulf %350, %349 : vector<8x9xf32>
    %352 = arith.addf %344, %351 : vector<8x9xf32>
    %c0_378 = arith.constant 0 : index
    %c1_379 = arith.constant 1 : index
    %c7_380 = arith.constant 7 : index
    %c0_381 = arith.constant 0 : index
    %c0_382 = arith.constant 0 : index
    %353 = vector.load %arg2[%c0_378, %c1_379, %c7_380, %c0_381, %c0_382] : memref<2x2x8x8x9xf32, #tpu.memory_space<vmem>>, vector<1x1x1x8x9xf32>
    %354 = vector.shape_cast %353 : vector<1x1x1x8x9xf32> to vector<8x9xf32>
    %cst_383 = arith.constant 2.500000e-01 : f32
    %355 = vector.broadcast %cst_383 : f32 to vector<8x9xf32>
    %356 = arith.mulf %355, %354 : vector<8x9xf32>
    %c1_384 = arith.constant 1 : index
    %c1_385 = arith.constant 1 : index
    %c7_386 = arith.constant 7 : index
    %c0_387 = arith.constant 0 : index
    %c0_388 = arith.constant 0 : index
    %357 = vector.load %arg2[%c1_384, %c1_385, %c7_386, %c0_387, %c0_388] : memref<2x2x8x8x9xf32, #tpu.memory_space<vmem>>, vector<1x1x1x8x9xf32>
    %358 = vector.shape_cast %357 : vector<1x1x1x8x9xf32> to vector<8x9xf32>
    %cst_389 = arith.constant 5.000000e-01 : f32
    %359 = vector.broadcast %cst_389 : f32 to vector<8x9xf32>
    %360 = arith.mulf %359, %358 : vector<8x9xf32>
    %361 = arith.addf %356, %360 : vector<8x9xf32>
    %c0_390 = arith.constant 0 : index
    %c1_391 = arith.constant 1 : index
    %c7_392 = arith.constant 7 : index
    %c1_393 = arith.constant 1 : index
    %c0_394 = arith.constant 0 : index
    %362 = vector.load %arg2[%c0_390, %c1_391, %c7_392, %c1_393, %c0_394] : memref<2x2x8x8x9xf32, #tpu.memory_space<vmem>>, vector<1x1x1x7x9xf32>
    %363 = vector.shape_cast %362 : vector<1x1x1x7x9xf32> to vector<7x9xf32>
    %c0_395 = arith.constant 0 : index
    %c1_396 = arith.constant 1 : index
    %c7_397 = arith.constant 7 : index
    %c0_398 = arith.constant 0 : index
    %c0_399 = arith.constant 0 : index
    %364 = vector.load %arg3[%c0_395, %c1_396, %c7_397, %c0_398, %c0_399] : memref<2x2x8x8x9xf32, #tpu.memory_space<vmem>>, vector<1x1x1x1x9xf32>
    %365 = vector.shape_cast %364 : vector<1x1x1x1x9xf32> to vector<1x9xf32>
    %366 = tpu.concatenate %363, %365 in 0 : vector<7x9xf32>, vector<1x9xf32> -> vector<8x9xf32>
    %cst_400 = arith.constant 2.500000e-01 : f32
    %367 = vector.broadcast %cst_400 : f32 to vector<8x9xf32>
    %368 = arith.mulf %367, %366 : vector<8x9xf32>
    %369 = arith.addf %361, %368 : vector<8x9xf32>
    %370 = vector.extract_strided_slice %352 {offsets = [0, 0], sizes = [8, 8], strides = [1, 1]} : vector<8x9xf32> to vector<8x8xf32>
    %cst_401 = arith.constant 2.500000e-01 : f32
    %371 = vector.broadcast %cst_401 : f32 to vector<8x8xf32>
    %372 = arith.mulf %371, %370 : vector<8x8xf32>
    %373 = vector.extract_strided_slice %369 {offsets = [0, 0], sizes = [8, 8], strides = [1, 1]} : vector<8x9xf32> to vector<8x8xf32>
    %cst_402 = arith.constant 5.000000e-01 : f32
    %374 = vector.broadcast %cst_402 : f32 to vector<8x8xf32>
    %375 = arith.mulf %374, %373 : vector<8x8xf32>
    %376 = arith.addf %372, %375 : vector<8x8xf32>
    %377 = vector.extract_strided_slice %352 {offsets = [0, 1], sizes = [8, 8], strides = [1, 1]} : vector<8x9xf32> to vector<8x8xf32>
    %cst_403 = arith.constant 2.500000e-01 : f32
    %378 = vector.broadcast %cst_403 : f32 to vector<8x8xf32>
    %379 = arith.mulf %378, %377 : vector<8x8xf32>
    %380 = arith.addf %376, %379 : vector<8x8xf32>
    %c7_404 = arith.constant 7 : index
    %c0_405 = arith.constant 0 : index
    %c0_406 = arith.constant 0 : index
    %381 = vector.load %arg4[%c7_404, %c0_405, %c0_406] : memref<8x8x8xf32, #tpu.memory_space<vmem>>, vector<1x8x8xf32>
    %382 = vector.shape_cast %381 : vector<1x8x8xf32> to vector<8x8xf32>
    %383 = vector.shape_cast %380 : vector<8x8xf32> to vector<1x8x8xf32>
    tpu.vector_store %arg4[%c7_404, %c0_405, %c0_406], %383 {strides = array<i32>} : memref<8x8x8xf32, #tpu.memory_space<vmem>>, vector<1x8x8xf32>,
    return
  }
  func.func @transform_0(%arg0: i32, %arg1: i32) -> (i32, i32, i32, i32, i32) {
    %c0_i32 = arith.constant 0 : i32
    %c0_i32_0 = arith.constant 0 : i32
    %c0_i32_1 = arith.constant 0 : i32
    %c0_i32_2 = arith.constant 0 : i32
    return %c0_i32, %c0_i32_0, %arg0, %arg1, %c0_i32_1 : i32, i32, i32, i32, i32
  }
  func.func @transform_1(%arg0: i32, %arg1: i32) -> (i32, i32, i32, i32, i32) {
    %c1_i32 = arith.constant 1 : i32
    %0 = arith.addi %arg1, %c1_i32 : i32
    %c1_i32_0 = arith.constant 1 : i32
    %1 = arith.muli %0, %c1_i32_0 : i32
    %c0_i32 = arith.constant 0 : i32
    %c0_i32_1 = arith.constant 0 : i32
    %c0_i32_2 = arith.constant 0 : i32
    %c0_i32_3 = arith.constant 0 : i32
    return %c0_i32, %c0_i32_1, %arg0, %1, %c0_i32_2 : i32, i32, i32, i32, i32
  }
  func.func @transform_2(%arg0: i32, %arg1: i32) -> (i32, i32, i32) {
    %c0_i32 = arith.constant 0 : i32
    %c0_i32_0 = arith.constant 0 : i32
    return %arg0, %arg1, %c0_i32 : i32, i32, i32
  }
}

</mosaic_0001>

<bundles_post_ra>
// kernel: _lambda_.1
= control target key start
LH: loop header
LB: loop body
LE: loop exit
PB: predicated region body
PF: predicated region fallthrough
CT: control target
= control target key end

     0   :  { %vm345_vm0 = vcmask 1046528   ;;  %s752_s17 = smov 127   ;;  %s996_s0 = inlined_call_operand.vmem [shape: f32[2,2,8,16,9], index: 0, kind: input, shape index: {}, may-alias: {0,1}]   ;;  %s997_s1 = inlined_call_operand.vmem [shape: f32[2,2,8,16,9], index: 1, kind: input, shape index: {}, may-alias: {0,1}]   ;;  %s998_s2 = inlined_call_operand.hbm [shape: f32[8,8,8], index: 2, kind: output, shape index: {}]  }
   0x1   :  { %v104_v0 = vld [vmem:[%s996_s0 + $0x20] sm:$0xff]  ;;  %v696_v2 = vld [vmem:[%s997_s1 + $0x28] sm:$0xff]  ;;  %v106_v6 = vld [vmem:[%s996_s0 + $0x30] sm:$0xff] }
   0x2   :  { %v136_v1 = vld [vmem:[%s996_s0 + $0x120] sm:$0xff]  ;;  %105 = vst [vmem:[#allocation2 + $0x10] sm:$0xff] %v104_v0  ;;  %267 = vst [vmem:[#allocation3 + $0xd8] sm:$0xff] %v696_v2  ;;  %v694_v5 = vld [vmem:[%s997_s1 + $0x8] sm:$0xff]  ;;  %v419_v9 = vmul.f32 0.25, %v104_v0  ;;  %v461_v16 = vmul.f32 0.25, %v106_v6 }
   0x3   :  { %v100_v3 = vld [vmem:[%s996_s0] sm:$0xff]  ;;  %263 = vst [vmem:[#allocation3 + $0xb0] sm:$0xff] %v694_v5  ;;  %v138_v7 = vld [vmem:[%s996_s0 + $0x130] sm:$0xff]  ;;  %v697_v8 = vld [vmem:[%s997_s1 + $0x38] sm:$0xff]  ;;  %v422_v10 = vmul.f32 0.5, %v136_v1 }
   0x4   :  { %v132_v4 = vld [vmem:[%s996_s0 + $0x100] sm:$0xff]  ;;  %101 = vst [vmem:[#allocation2] sm:$0xff] %v100_v3  ;;  %107 = vst [vmem:[#allocation2 + $0x18] sm:$0xff] %v106_v6  ;;  %v102_v11 = vld [vmem:[%s996_s0 + $0x10] sm:$0xff]  ;;  %v335_v14 = vmul.f32 0.25, %v100_v3  ;;  %v464_v20 = vmul.f32 0.5, %v138_v7 }
   0x5   :  { %269 = vst [vmem:[#allocation3 + $0x18] sm:$0xff] %v697_v8  ;;  %v134_v12 = vld [vmem:[%s996_s0 + $0x110] sm:$0xff]  ;;  %v695_v13 = vld [vmem:[%s997_s1 + $0x18] sm:$0xff]  ;;  %v338_v15 = vmul.f32 0.5, %v132_v4  ;;  %103 = vst [vmem:[#allocation2 + $0x8] sm:$0xff] %v102_v11  ;;  %v377_v21 = vmul.f32 0.25, %v102_v11  ;;  %v423_v42 = vadd.f32 %v422_v10, %v419_v9 }
   0x6   :  { %265 = vst [vmem:[#allocation3] sm:$0xff] %v695_v13  ;;  %v110_v17 = vld [vmem:[%s996_s0 + $0x50] sm:$0xff]  ;;  %v699_v19 = vld [vmem:[%s997_s1 + $0x58] sm:$0xff]  ;;  %v380_v22 = vmul.f32 0.5, %v134_v12  ;;  %v108_v23 = vld [vmem:[%s996_s0 + $0x40] sm:$0xff]  ;;  %v465_v49 = vadd.f32 %v464_v20, %v461_v16 }
   0x7   :  { %v142_v18 = vld [vmem:[%s996_s0 + $0x150] sm:$0xff]  ;;  %111 = vst [vmem:[#allocation2 + $0x28] sm:$0xff] %v110_v17  ;;  %273 = vst [vmem:[#allocation3 + $0x68] sm:$0xff] %v699_v19  ;;  %v140_v24 = vld [vmem:[%s996_s0 + $0x140] sm:$0xff]  ;;  %v545_v26 = vmul.f32 0.25, %v110_v17  ;;  %v503_v28 = vmul.f32 0.25, %v108_v23  ;;  %v339_v47 = vadd.f32 %v338_v15, %v335_v14 }
   0x8   :  { %v698_v25 = vld [vmem:[%s997_s1 + $0x48] sm:$0xff]  ;;  %v548_v27 = vmul.f32 0.5, %v142_v18  ;;  %109 = vst [vmem:[#allocation2 + $0x20] sm:$0xff] %v108_v23  ;;  %v114_v29 = vld [vmem:[%s996_s0 + $0x70] sm:$0xff]  ;;  %v701_v31 = vld [vmem:[%s997_s1 + $0x78] sm:$0xff]  ;;  %v506_v32 = vmul.f32 0.5, %v140_v24  ;;  %v381_v52 = vadd.f32 %v380_v22, %v377_v21 }
   0x9   :  { %271 = vst [vmem:[#allocation3 + $0x50] sm:$0xff] %v698_v25  ;;  %v146_v30 = vld [vmem:[%s996_s0 + $0x170] sm:$0xff]  ;;  %115 = vst [vmem:[#allocation2 + $0x38] sm:$0xff] %v114_v29  ;;  %v629_v33 = vmul.f32 0.25, %v114_v29  ;;  %v112_v35 = vld [vmem:[%s996_s0 + $0x60] sm:$0xff] }
   0xa   :  { %277 = vst [vmem:[#allocation3 + $0x48] sm:$0xff] %v701_v31  ;;  %v632_v34 = vmul.f32 0.5, %v146_v30  ;;  %v144_v36 = vld [vmem:[%s996_s0 + $0x160] sm:$0xff]  ;;  %v700_v37 = vld [vmem:[%s997_s1 + $0x68] sm:$0xff]  ;;  %v424_v38 = vld [vmem:[#allocation2 + $0x11] sm:$0x7f]  ;;  %v549_v58 = vadd.f32 %v548_v27, %v545_v26  ;;  %v507_v59 = vadd.f32 %v506_v32, %v503_v28 }
   0xb   :  { %v426_v39 = vld [vmem:[#allocation3 + $0xd8] sm:$0x1]  ;;  %113 = vst [vmem:[#allocation2 + $0x30] sm:$0xff] %v112_v35  ;;  %275 = vst [vmem:[#allocation3 + $0x30] sm:$0xff] %v700_v37  ;;  %v587_v40 = vmul.f32 0.25, %v112_v35  ;;  %v590_v41 = vmul.f32 0.5, %v144_v36 }
   0xc   :  { %v428_v43 = vrot.slane %v426_v39, 1  ;;  %v340_v44 = vld [vmem:[#allocation2 + $0x1] sm:$0x7f]  ;;  %v341_v45 = vld [vmem:[#allocation3 + $0xb0] sm:$0x1]  ;;  %v704_v60 = vld [vmem:[%s997_s1 + $0xa8] sm:$0xff]  ;;  %v633_v2 = vadd.f32 %v632_v34, %v629_v33 }
   0xd   :  { %v846_v46 = vld [vmem:[%s996_s0 + $0xa0] sm:$0xff]  ;;  %v343_v48 = vrot.slane %v341_v45, 1  ;;  %v466_v50 = vld [vmem:[#allocation2 + $0x19] sm:$0x7f]  ;;  %v468_v51 = vld [vmem:[#allocation3 + $0x18] sm:$0x1]  ;;  %v858_v8 = vadd.f32 %v590_v41, %v587_v40 }
   0xe   :  { %121 = vst [vmem:[#allocation2 + $0x50] sm:$0xff] %v846_v46  ;;  %v152_v53 = vld [vmem:[%s996_s0 + $0x1a0] sm:$0xff]  ;;  %v430_v54 = vsel %vm345_vm0, %v424_v38, %v428_v43  ;;  %v470_v55 = vrot.slane %v468_v51, 1  ;;  %v382_v56 = vld [vmem:[#allocation2 + $0x9] sm:$0x7f]  ;;  %283 = vst [vmem:[#allocation3 + $0xe8] sm:$0xff] %v704_v60 }
   0xf   :  { %v384_v57 = vld [vmem:[#allocation3] sm:$0x1]  ;;  %v431_v61 = vmul.f32 0.25, %v430_v54  ;;  %v346_v62 = vsel %vm345_vm0, %v340_v44, %v343_v48  ;;  %v550_v0 = vld [vmem:[#allocation2 + $0x29] sm:$0x7f]  ;;  %v122_v33 = vld [vmem:[%s996_s0 + $0xb0] sm:$0xff] }
  0x10   :  { %v386_v63 = vrot.slane %v384_v57, 1  ;;  %v552_v1 = vld [vmem:[#allocation3 + $0x68] sm:$0x1]  ;;  %v347_v3 = vmul.f32 0.25, %v346_v62  ;;  %v472_v4 = vsel %vm345_vm0, %v466_v50, %v470_v55  ;;  %v508_v6 = vld [vmem:[#allocation2 + $0x21] sm:$0x7f] }
  0x11   :  { %v554_v5 = vrot.slane %v552_v1, 1  ;;  %v510_v7 = vld [vmem:[#allocation3 + $0x50] sm:$0x1]  ;;  %v432_v9 = vadd.f32 %v431_v61, %v423_v42  ;;  %v473_v10 = vmul.f32 0.25, %v472_v4  ;;  %v634_v13 = vld [vmem:[#allocation2 + $0x39] sm:$0x7f] }
  0x12   :  { %v388_v11 = vsel %vm345_vm0, %v382_v56, %v386_v63  ;;  %v512_v12 = vrot.slane %v510_v7, 1  ;;  %v636_v14 = vld [vmem:[#allocation3 + $0x48] sm:$0x1]  ;;  %v348_v15 = vadd.f32 %v347_v3, %v339_v47  ;;  %v592_v19 = vld [vmem:[#allocation2 + $0x31] sm:$0x7f]  ;;  %v116_v25 = vld [vmem:[%s996_s0 + $0x80] sm:$0xff] }
  0x13   :  { %v389_v16 = vmul.f32 0.25, %v388_v11  ;;  %v556_v17 = vsel %vm345_vm0, %v550_v0, %v554_v5  ;;  %v638_v18 = vrot.slane %v636_v14, 1  ;;  %v594_v20 = vld [vmem:[#allocation3 + $0x30] sm:$0x1]  ;;  %v862_v21 = vmul.f32 0.25, %v432_v9  ;;  %v148_v26 = vld [vmem:[%s996_s0 + $0x180] sm:$0xff] }
  0x14   :  { %v474_v22 = vadd.f32 %v473_v10, %v465_v49  ;;  %v557_v23 = vmul.f32 0.25, %v556_v17  ;;  %v514_v24 = vsel %vm345_vm0, %v508_v6, %v512_v12  ;;  %v702_v27 = vld [vmem:[%s997_s1 + $0x88] sm:$0xff]  ;;  %v874_v28 = vmul.f32 0.25, %v348_v15  ;;  %117 = vst [vmem:[#allocation2 + $0x40] sm:$0xff] %v116_v25  ;;  %v154_v34 = vld [vmem:[%s996_s0 + $0x1b0] sm:$0xff]  ;;  %123 = vst [vmem:[#allocation2 + $0x58] sm:$0xff] %v122_v33 }
  0x15   :  { %v390_v29 = vadd.f32 %v389_v16, %v381_v52  ;;  %v515_v30 = vmul.f32 0.25, %v514_v24  ;;  %v640_v31 = vsel %vm345_vm0, %v634_v13, %v638_v18  ;;  %v440_v32 = vld [vmem:[#allocation2 + $0x51] sm:$0x7f]  ;;  %279 = vst [vmem:[#allocation3 + $0x80] sm:$0xff] %v702_v27  ;;  %453 = vrot.lane.b32.xlu1 %v862_v21, %s752_s17  ;;  %v596_v38 = vrot.slane %v594_v20, 1  ;;  %v705_v39 = vld [vmem:[%s997_s1 + $0xb8] sm:$0xff] }
  0x16   :  { %v885_v35 = vmul.f32 0.25, %v474_v22  ;;  %v558_v36 = vadd.f32 %v557_v23, %v549_v58  ;;  %v641_v37 = vmul.f32 0.25, %v640_v31  ;;  %v118_v40 = vld [vmem:[%s996_s0 + $0x90] sm:$0xff]  ;;  %369 = vrot.lane.b32.xlu0 %v874_v28, %s752_s17  ;;  %v435_v44 = vmul.f32 0.25, %v846_v46  ;;  %v442_v47 = vld [vmem:[#allocation3 + $0xe8] sm:$0x1] }
  0x17   :  { %v150_v41 = vld [vmem:[%s996_s0 + $0x190] sm:$0xff]  ;;  %v898_v42 = vmul.f32 0.25, %v390_v29  ;;  %v516_v43 = vadd.f32 %v515_v30, %v507_v59  ;;  %v438_v45 = vmul.f32 0.5, %v152_v53  ;;  %285 = vst [vmem:[#allocation3 + $0xb8] sm:$0xff] %v705_v39  ;;  %119 = vst [vmem:[#allocation2 + $0x48] sm:$0xff] %v118_v40  ;;  %v703_v48 = vld [vmem:[%s997_s1 + $0x98] sm:$0xff]  ;;  %v598_v51 = vsel %vm345_vm0, %v592_v19, %v596_v38 }
  0x18   :  { %v904_v49 = vmul.f32 0.25, %v558_v36  ;;  %v642_v50 = vadd.f32 %v641_v37, %v633_v2  ;;  %v444_v52 = vrot.slane %v442_v47, 1  ;;  %281 = vst [vmem:[#allocation3 + $0x88] sm:$0xff] %v703_v48  ;;  %v126_v54 = vld [vmem:[%s996_s0 + $0xd0] sm:$0xff]  ;;  %v707_v53 = vld [vmem:[%s997_s1 + $0xd8] sm:$0xff]  ;;  %v599_v56 = vmul.f32 0.25, %v598_v51 }
  0x19   :  { %v158_v46 = vld [vmem:[%s996_s0 + $0x1d0] sm:$0xff]  ;;  %v916_v55 = vmul.f32 0.25, %v516_v43  ;;  %v439_v57 = vadd.f32 %v438_v45, %v435_v44  ;;  %v351_v58 = vmul.f32 0.25, %v116_v25  ;;  %127 = vst [vmem:[#allocation2 + $0x68] sm:$0xff] %v126_v54  ;;  %289 = vst [vmem:[#allocation3 + $0xf0] sm:$0xff] %v707_v53  ;;  %v124_v59 = vld [vmem:[%s996_s0 + $0xc0] sm:$0xff]  ;;  %495 = vrot.lane.b32.xlu1 %v885_v35, %s752_s17 }
  0x1a   :  { %v156_v60 = vld [vmem:[%s996_s0 + $0x1c0] sm:$0xff]  ;;  %v706_v61 = vld [vmem:[%s997_s1 + $0xc8] sm:$0xff]  ;;  %v929_v62 = vmul.f32 0.25, %v642_v50  ;;  %v446_v63 = vsel %vm345_vm0, %v440_v32, %v444_v52  ;;  %v354_v0 = vmul.f32 0.5, %v148_v26  ;;  %v477_v1 = vmul.f32 0.25, %v122_v33  ;;  %125 = vst [vmem:[#allocation2 + $0x60] sm:$0xff] %v124_v59  ;;  %411 = vrot.lane.b32.xlu0 %v898_v42, %s752_s17 }
  0x1b   :  { %287 = vst [vmem:[#allocation3 + $0x60] sm:$0xff] %v706_v61  ;;  %v130_v2 = vld [vmem:[%s996_s0 + $0xf0] sm:$0xff]  ;;  %v709_v4 = vld [vmem:[%s997_s1 + $0xf8] sm:$0xff]  ;;  %v600_v5 = vadd.f32 %v599_v56, %v858_v8  ;;  %v447_v6 = vmul.f32 0.25, %v446_v63  ;;  %v480_v7 = vmul.f32 0.5, %v154_v34  ;;  %v393_v9 = vmul.f32 0.25, %v118_v40 }
  0x1c   :  { %v162_v3 = vld [vmem:[%s996_s0 + $0x1f0] sm:$0xff]  ;;  %131 = vst [vmem:[#allocation2 + $0x78] sm:$0xff] %v130_v2  ;;  %293 = vst [vmem:[#allocation3 + $0x78] sm:$0xff] %v709_v4  ;;  %v947_v10 = vld [vmem:[%s996_s0 + $0xe0] sm:$0xff]  ;;  %v355_v8 = vadd.f32 %v354_v0, %v351_v58  ;;  %v396_v15 = vmul.f32 0.5, %v150_v41  ;;  %v561_v16 = vmul.f32 0.25, %v126_v54 }
  0x1d   :  { %v952_v11 = vld [vmem:[%s996_s0 + $0x1e0] sm:$0xff]  ;;  %v708_v12 = vld [vmem:[%s997_s1 + $0xe8] sm:$0xff]  ;;  %129 = vst [vmem:[#allocation2 + $0x70] sm:$0xff] %v947_v10  ;;  %v958_v17 = vmul.f32 0.25, %v600_v5  ;;  %v448_v18 = vadd.f32 %v447_v6, %v439_v57  ;;  %v481_v20 = vadd.f32 %v480_v7, %v477_v1  ;;  %v482_v22 = vld [vmem:[#allocation2 + $0x59] sm:$0x7f] }
  0x1e   :  { %v356_v13 = vld [vmem:[#allocation2 + $0x41] sm:$0x7f]  ;;  %v358_v14 = vld [vmem:[#allocation3 + $0x80] sm:$0x1]  ;;  %291 = vst [vmem:[#allocation3 + $0x8] sm:$0xff] %v708_v12 }
  0x1f   :  { %v360_v19 = vrot.slane %v358_v14, 1 }
  0x20   :  { %7 = vsyncpa [#allocation5], 0  ;;  %579 = vrot.lane.b32.xlu1 %v904_v49, %s752_s17  ;;  %v484_v23 = vld [vmem:[#allocation3 + $0xb8] sm:$0x1]  ;;  %v397_v24 = vadd.f32 %v396_v15, %v393_v9  ;;  %v398_v25 = vld [vmem:[#allocation2 + $0x49] sm:$0x7f]  ;;  %537 = vrot.lane.b32.xlu0 %v916_v55, %s752_s17 }
  0x21   :  { %v564_v26 = vmul.f32 0.5, %v158_v46  ;;  %v519_v27 = vmul.f32 0.25, %v124_v59  ;;  %v450_v29 = vmul.f32 0.5, %v448_v18  ;;  %v362_v30 = vsel %vm345_vm0, %v356_v13, %v360_v19  ;;  %v400_v32 = vld [vmem:[#allocation3 + $0x88] sm:$0x1]  ;;  %s753_s0 = smov [#allocation4]  }
  0x22   :  { %v486_v31 = vrot.slane %v484_v23, 1  ;;  %v522_v33 = vmul.f32 0.5, %v156_v60  ;;  %v363_v34 = vmul.f32 0.25, %v362_v30  ;;  %v402_v36 = vrot.slane %v400_v32, 1  ;;  %v566_v38 = vld [vmem:[#allocation2 + $0x69] sm:$0x7f] }
  0x23   :  { %v565_v37 = vadd.f32 %v564_v26, %v561_v16  ;;  %v568_v39 = vld [vmem:[#allocation3 + $0xf0] sm:$0x1]  ;;  %v451_v40 = vadd.f32 %v450_v29, %v862_v21  ;;  %v524_v45 = vld [vmem:[#allocation2 + $0x61] sm:$0x7f]  ;;  %v526_v47 = vld [vmem:[#allocation3 + $0x60] sm:$0x1] }
  0x24   :  { %v488_v41 = vsel %vm345_vm0, %v482_v22, %v486_v31  ;;  %v570_v43 = vrot.slane %v568_v39, 1  ;;  %v523_v44 = vadd.f32 %v522_v33, %v519_v27  ;;  %663 = vrot.lane.b32.xlu1 %v929_v62, %s752_s17  ;;  %v364_v48 = vadd.f32 %v363_v34, %v355_v8  ;;  %v652_v54 = vld [vmem:[#allocation3 + $0x78] sm:$0x1]  ;;  %621 = vrot.lane.b32.xlu0 %v958_v17, %s752_s17  ;;  %v650_v57 = vld [vmem:[#allocation2 + $0x79] sm:$0x7f]  ;;  %s674_s1 = sshll.u32 %s753_s0, 4  ;;  %s675_s1 = int_to_ptr.vmem [resolvable:$true] %s674_s1 }
  0x25   :  { %v489_v50 = vmul.f32 0.25, %v488_v41  ;;  %v404_v51 = vsel %vm345_vm0, %v398_v25, %v402_v36  ;;  %v528_v52 = vrot.slane %v526_v47, 1  ;;  %v645_v53 = vmul.f32 0.25, %v130_v2  ;;  %v610_v63 = vld [vmem:[#allocation3 + $0x8] sm:$0x1]  ;;  %s730_s17 = scalar_lea.vmem %s675_s1, 1024  ;;  %p735_p1 = scmp.lt.s32.totalorder %s675_s1, %s675_s1 }
  0x26   :  { %v405_v46 = vmul.f32 0.25, %v404_v51  ;;  %v572_v21 = vsel %vm345_vm0, %v566_v38, %v570_v43  ;;  %v648_v56 = vmul.f32 0.5, %v162_v3  ;;  %v366_v58 = vmul.f32 0.5, %v364_v48  ;;  %v608_v6 = vld [vmem:[#allocation2 + $0x71] sm:$0x7f]  ;;  %p731_p0 = scmp.ne.s32.totalorder %s675_s1, %s730_s17  ;;  %p736_p2 = scmp.lt.s32.totalorder %s730_s17, %s730_s17 }
  0x27   :  { %v490_v59 = vadd.f32 %v489_v50, %v481_v20  ;;  %v573_v60 = vmul.f32 0.25, %v572_v21  ;;  %v530_v61 = vsel %vm345_vm0, %v524_v45, %v528_v52  ;;  %v654_v5 = vrot.slane %v652_v54, 1 }
  0x28   :  { %v406_v0 = vadd.f32 %v405_v46, %v397_v24  ;;  %v531_v1 = vmul.f32 0.25, %v530_v61  ;;  %v649_v4 = vadd.f32 %v648_v56, %v645_v53  ;;  %v367_v7 = vadd.f32 %v366_v58, %v874_v28  ;;  %p737_p3 = por %p736_p2, %p735_p1 }
  0x29   :  { %v492_v9 = vmul.f32 0.5, %v490_v59  ;;  %v574_v12 = vadd.f32 %v573_v60, %v565_v37  ;;  %v603_v8 = vmul.f32 0.25, %v947_v10  ;;  %v656_v13 = vsel %vm345_vm0, %v650_v57, %v654_v5 }
  0x2a   :  { %v408_v2 = vmul.f32 0.5, %v406_v0  ;;  %v532_v3 = vadd.f32 %v531_v1, %v523_v44  ;;  %v606_v14 = vmul.f32 0.5, %v952_v11  ;;  %v657_v18 = vmul.f32 0.25, %v656_v13  ;;  %p738_p4 = pnand %p737_p3, %p731_p0 }
  0x2b   :  { %v493_v15 = vadd.f32 %v492_v9, %v885_v35  ;;  %v576_v16 = vmul.f32 0.5, %v574_v12  ;;  %v612_v19 = vrot.slane %v610_v63, 1  ;;  %vm373_vm1 = vcmask 64512  }
  0x2c   :  { %v409_v20 = vadd.f32 %v408_v2, %v898_v42  ;;  %v534_v22 = vmul.f32 0.5, %v532_v3  ;;  %v607_v23 = vadd.f32 %v606_v14, %v603_v8  ;;  %v658_v24 = vadd.f32 %v657_v18, %v649_v4 }
  0x2d   :  { %v577_v28 = vadd.f32 %v576_v16, %v904_v49  ;;  %v614_v10 = vsel %vm345_vm0, %v608_v6, %v612_v19 }
  0x2e   :  { %v535_v25 = vadd.f32 %v534_v22, %v916_v55  ;;  %v615_v26 = vmul.f32 0.25, %v614_v10  ;;  %v660_v27 = vmul.f32 0.5, %v658_v24 }
  0x30   :  { %v616_v29 = vadd.f32 %v615_v26, %v607_v23  ;;  %v661_v11 = vadd.f32 %v660_v27, %v929_v62 }
  0x32   :  { %v618_v35 = vmul.f32 0.5, %v616_v29 }
  0x34   :  { %v619_v30 = vadd.f32 %v618_v35, %v958_v17 }
  0x87   :  { %v454_v31 = vpop.permute.xlu1 %453 }
  0x88   :  { %v456_v42 = vadd.f32 %v454_v31, %v451_v40  ;;  %v370_v32 = vpop.permute.xlu0 %369 }
  0x89   :  { %v372_v33 = vadd.f32 %v370_v32, %v367_v7 }
  0x8a   :  { %458 = vst.msk [vmem:[#allocation4 + $0x10] sm:$0xff] %vm373_vm1, %v456_v42 }
  0x8b   :  { %374 = vst.msk [vmem:[#allocation4] sm:$0xff] %vm373_vm1, %v372_v33  ;;  %v496_v49 = vpop.permute.xlu1 %495 }
  0x8c   :  { %v498_v34 = vadd.f32 %v496_v49, %v493_v15  ;;  %v412_v55 = vpop.permute.xlu0 %411 }
  0x8d   :  { %v414_v36 = vadd.f32 %v412_v55, %v409_v20 }
  0x8e   :  { %500 = vst.msk [vmem:[#allocation4 + $0x18] sm:$0xff] %vm373_vm1, %v498_v34 }
  0x8f   :  { %416 = vst.msk [vmem:[#allocation4 + $0x8] sm:$0xff] %vm373_vm1, %v414_v36 }
  0x92   :  { %v580_v62 = vpop.permute.xlu1 %579  ;;  %v538_v17 = vpop.permute.xlu0 %537 }
  0x93   :  { %v582_v37 = vadd.f32 %v580_v62, %v577_v28  ;;  %v540_v38 = vadd.f32 %v538_v17, %v535_v25 }
  0x95   :  { %584 = vst.msk [vmem:[#allocation4 + $0x28] sm:$0xff] %vm373_vm1, %v582_v37  ;;  %542 = vst.msk [vmem:[#allocation4 + $0x20] sm:$0xff] %vm373_vm1, %v540_v38 }
  0x96   :  { %v664_v39 = vpop.permute.xlu1 %663  ;;  %v622_v41 = vpop.permute.xlu0 %621 }
  0x97   :  { %v666_v40 = vadd.f32 %v664_v39, %v661_v11  ;;  %v624_v43 = vadd.f32 %v622_v41, %v619_v30 }
  0x99   :  { %668 = vst.msk [vmem:[#allocation4 + $0x38] sm:$0xff] %vm373_vm1, %v666_v40  ;;  %626 = vst.msk [vmem:[#allocation4 + $0x30] sm:$0xff] %vm373_vm1, %v624_v43 }
  0x9a   :  { %741 = shalt.err (!%p738_p4)
}
  0x9b   :  { %s754_s23 = smov 128   ;;  %s755_s24 = smov 8  }
  0x9c   :  { %680 = dma.vmem_to_hbm [thread:$0]  %s675_s1, 1024, %s998_s2, [#allocation5], %s754_s23, %s754_s23, %s755_s24  }
  0x9d   :  { %750 = dma.done.wait [#allocation5], 1024  }
  0x9e   :  { %751 = vsyncadd [#allocation5], 4294966272 }
  0x9f   :  { %684 = vsyncpa [#allocation5], 1 }

</bundles_post_ra>
